<compile_context>
chip_gen: v6e
topology: v6e:2x2x1
jax: 0.10.0
libtpu: 0.0.40
codegen_flags: <defaults>
</compile_context>

<pallas_src>
import functools

import numpy as np

import jax
import jax.numpy as jnp
from jax.experimental import pallas as pl
from jax.experimental.pallas import tpu as pltpu


PRELU_ALPHA = 0.25  # nn.PReLU() default scalar weight; _init_weights leaves it.


# ----------------------------------------------------------------------------
# Pallas kernel: one (batch, row-tile) block of a stride-1 'same'/replicate
# conv, as a single im2col matmul + bias (+ fused scalar PReLU).
# ----------------------------------------------------------------------------
def _conv_im2col_kernel(x_ref, w_ref, b_ref, o_ref, patch_ref,
                        *, kh, kw, wp, lout, cin, alpha):
    """x_ref:     (1, 1, Cin_p, Lc)   bf16 flattened padded row-chunk
       w_ref:     (Cout, K)           bf16, K = kh*kw*Cin_p, K-order (i, j, c)
       b_ref:     (Cout, 1)           f32
       o_ref:     (1, 1, Cout, Lout)  f32, Lout = tile_rows * Wp (lanes)
       patch_ref: (K, Lout)           bf16 VMEM scratch (im2col patches)
    """
    # Build the im2col patches from the single padded chunk with static slices
    # (shifted tap views live only in VMEM; nothing is replicated in HBM).
    for i in range(kh):
        for j in range(kw):
            t = i * kw + j
            off = i * wp + j
            patch_ref[t * cin:(t + 1) * cin, :] = x_ref[0, 0, :, off:off + lout]

    # One MXU matmul with K = kh*kw*Cin_p; f32 accumulation.
    acc = jnp.dot(w_ref[...], patch_ref[...],
                  preferred_element_type=jnp.float32)        # (Cout, Lout)
    acc = acc + b_ref[...]                                   # (Cout, 1) bcast
    if alpha is not None:                                    # fused scalar PReLU
        acc = jnp.where(acc >= 0.0, acc, alpha * acc)
    o_ref[0, 0] = acc.astype(o_ref.dtype)                    # lane-dense store


def _choose_tile_rows(h, max_rows):
    th = min(h, max_rows)
    while h % th:
        th -= 1
    return th


def conv2d_nchw_same_replicate(x, w_oihw, b, *, alpha=None, max_tile_rows=32):
    """NCHW conv2d, stride 1, padding='same', padding_mode='replicate'.

    x: (B, Cin, H, W) f32; w_oihw: (Cout, Cin, kh, kw) f32; b: (Cout,) f32.
    alpha: optional scalar PReLU negative slope fused after the bias add.
    Returns (B, Cout, H, W) f32.
    """
    B, Cin, H, W = x.shape
    Cout, _, kh, kw = w_oihw.shape
    assert kh % 2 == 1 and kw % 2 == 1, "odd kernel sizes only ('same' padding)"
    ph, pw = (kh - 1) // 2, (kw - 1) // 2
    Hp, Wp = H + 2 * ph, W + 2 * pw
    cin_p = ((Cin + 7) // 8) * 8          # pad channels to a sublane multiple

    # Glue (pure data movement): replicate spatial pad, zero channel pad,
    # flatten spatial dims, add kw-1 trailing slack for the shifted-tap trick.
    xp = jnp.pad(x, ((0, 0), (0, 0), (ph, ph), (pw, pw)), mode="edge")
    xp = jnp.pad(xp, ((0, 0), (0, cin_p - Cin), (0, 0), (0, 0)))
    xf = xp.reshape(B, cin_p, Hp * Wp).astype(jnp.bfloat16)
    xf = jnp.pad(xf, ((0, 0), (0, 0), (0, kw - 1)))

    # Row tiling: each tile produces TH output rows; its input chunk carries a
    # (kh-1)-row halo (tiny duplication, nowhere near the old 9x tap copies).
    TH = _choose_tile_rows(H, max_tile_rows)
    n_tiles = H // TH
    Lout = TH * Wp
    Lc = (TH + kh - 1) * Wp + (kw - 1)
    xt = jnp.stack(
        [jax.lax.slice_in_dim(xf, t * TH * Wp, t * TH * Wp + Lc, axis=2)
         for t in range(n_tiles)], axis=1)          # (B, n_tiles, cin_p, Lc)

    # Weights -> (Cout, K) with K ordered (i, j, c); bias -> (Cout, 1).
    K = kh * kw * cin_p
    w_p = jnp.pad(w_oihw, ((0, 0), (0, cin_p - Cin), (0, 0), (0, 0)))
    w2 = jnp.transpose(w_p, (0, 2, 3, 1)).reshape(Cout, K).astype(jnp.bfloat16)
    b2 = b.reshape(Cout, 1).astype(jnp.float32)

    kernel = functools.partial(_conv_im2col_kernel, kh=kh, kw=kw, wp=Wp,
                               lout=Lout, cin=cin_p, alpha=alpha)
    out = pl.pallas_call(
        kernel,
        out_shape=jax.ShapeDtypeStruct((B, n_tiles, Cout, Lout), jnp.float32),
        grid_spec=pltpu.PrefetchScalarGridSpec(
            num_scalar_prefetch=0,
            grid=(B, n_tiles),
            in_specs=[
                pl.BlockSpec((1, 1, cin_p, Lc), lambda bb, tt: (bb, tt, 0, 0)),
                pl.BlockSpec((Cout, K), lambda bb, tt: (0, 0)),
                pl.BlockSpec((Cout, 1), lambda bb, tt: (0, 0)),
            ],
            out_specs=pl.BlockSpec((1, 1, Cout, Lout),
                                   lambda bb, tt: (bb, tt, 0, 0)),
            scratch_shapes=[pltpu.VMEM((K, Lout), jnp.bfloat16)],
        ),
        compiler_params=pltpu.CompilerParams(
            dimension_semantics=("parallel", "parallel")),
    )(xt, w2, b2)

    # Glue: stitch row tiles back and drop the pw garbage columns (already NCHW).
    y = out.reshape(B, n_tiles, Cout, TH, Wp)
    y = jnp.transpose(y, (0, 2, 1, 3, 4)).reshape(B, Cout, H, Wp)
    return y[:, :, :, :W]


# ----------------------------------------------------------------------------
# Glue: pixel shuffle in NCHW (matches torch.nn.PixelShuffle exactly)
# ----------------------------------------------------------------------------
def pixel_shuffle_nchw(x, r):
    B, C, H, W = x.shape
    c = C // (r * r)
    z = x.reshape(B, c, r, r, H, W)
    z = jnp.transpose(z, (0, 1, 4, 2, 5, 3))        # (B, c, H, r, W, r)
    return z.reshape(B, c, H * r, W * r)


# ----------------------------------------------------------------------------
# Parameter init (mirrors _init_weights: trunc_normal std=0.02, bias = 0).
# Weights kept in PyTorch OIHW layout.
# ----------------------------------------------------------------------------
def _trunc_normal(key, shape, std=0.02):
    return std * jax.random.truncated_normal(key, -2.0, 2.0, shape, jnp.float32)


def init_params(key, in_channels, channels, out_channels, scale, kernel_size):
    params = {"blocks": []}
    cur = in_channels
    for k, r in zip(kernel_size, scale):
        key, wk = jax.random.split(key)
        cout = channels * r * r                      # PixelShuffleBlock conv
        w = _trunc_normal(wk, (cout, cur, k, k))     # OIHW
        b = jnp.zeros((cout,), jnp.float32)
        params["blocks"].append((w, b, r))
        cur = channels
    key, wk = jax.random.split(key)
    params["out_w"] = _trunc_normal(wk, (out_channels, cur, 3, 3))
    params["out_b"] = jnp.zeros((out_channels,), jnp.float32)
    return params


# ----------------------------------------------------------------------------
# Forward pass (matches ConvEncoderDecoder.forward; NCHW in / NCHW out)
# ----------------------------------------------------------------------------
def conv_encoder_decoder_forward(x_nchw, params):
    x = x_nchw
    for (w, b, r) in params["blocks"]:
        # PixelShuffleBlock: conv -> pixel_shuffle -> PReLU.  nn.PReLU() has a
        # single scalar parameter, so it commutes with the channel/pixel
        # permutation and is fused into the conv kernel.  (If per-channel
        # PReLU were ever used, this fusion would be invalid.)
        y = conv2d_nchw_same_replicate(x, w, b, alpha=PRELU_ALPHA)
        x = pixel_shuffle_nchw(y, r)
    return conv2d_nchw_same_replicate(x, params["out_w"], params["out_b"],
                                      alpha=None)


# ----------------------------------------------------------------------------
# Pure-JAX reference (same bf16 operand / f32 accumulation policy)
# ----------------------------------------------------------------------------
def _ref_conv(x, w_oihw, b, alpha):
    kh, kw = w_oihw.shape[2], w_oihw.shape[3]
    ph, pw = (kh - 1) // 2, (kw - 1) // 2
    xp = jnp.pad(x, ((0, 0), (0, 0), (ph, ph), (pw, pw)), mode="edge")
    y = jax.lax.conv_general_dilated(
        xp.astype(jnp.bfloat16), w_oihw.astype(jnp.bfloat16),
        window_strides=(1, 1), padding="VALID",
        dimension_numbers=("NCHW", "OIHW", "NCHW"),
        preferred_element_type=jnp.float32)
    y = y + b.reshape(1, -1, 1, 1)
    if alpha is not None:
        y = jnp.where(y >= 0, y, alpha * y)
    return y


def _ref_forward(x, params):
    for (w, b, r) in params["blocks"]:
        y = _ref_conv(x, w, b, None)
        y = pixel_shuffle_nchw(y, r)
        x = jnp.where(y >= 0, y, PRELU_ALPHA * y)    # PReLU after shuffle
    return _ref_conv(x, params["out_w"], params["out_b"], None)


if __name__ == "__main__":
    key = jax.random.PRNGKey(0)
    pkey, xkey = jax.random.split(key)

    in_channels, channels, out_channels = 4, 8, 2
    scale = [2, 2]
    kernel_size = [3, 3]

    params = init_params(pkey, in_channels, channels, out_channels,
                         scale, kernel_size)
    x = jax.random.normal(xkey, (2, in_channels, 16, 16), jnp.float32)  # NCHW

    fwd = jax.jit(lambda xx: conv_encoder_decoder_forward(xx, params))
    out = jax.block_until_ready(fwd(x))
    assert out.shape == (2, out_channels, 16 * 2 * 2, 16 * 2 * 2), out.shape

    ref = jax.block_until_ready(_ref_forward(x, params))
    np.testing.assert_allclose(np.asarray(out), np.asarray(ref),
                               rtol=5e-2, atol=2e-4)
    print("KERNEL_OK")
</pallas_src>

<mosaic_0001>
module attributes {stable_mosaic.version = 11 : i64} {
  func.func @_conv_im2col_kernel(%arg0: i32, %arg1: i32, %arg2: memref<1x1x8x326xbf16, #tpu.memory_space<vmem>>, %arg3: memref<32x72xbf16, #tpu.memory_space<vmem>>, %arg4: memref<32x1xf32, #tpu.memory_space<vmem>>, %arg5: memref<1x1x32x288xf32, #tpu.memory_space<vmem>>, %arg6: memref<72x288xbf16, #tpu.memory_space<vmem>>) attributes {dimension_semantics = [#tpu.dimension_semantics<parallel>, #tpu.dimension_semantics<parallel>], iteration_bounds = array<i64: 2, 1>, scalar_prefetch = 0 : i64, scratch_operands = 1 : i64, tpu.core_type = #tpu.core_type<tc>, window_params = [{transform_indices = @transform_0, window_bounds = array<i64: 1, 1, 8, 326>}, {pipeline_mode = #tpu.pipeline_mode<synchronous>, transform_indices = @transform_1, window_bounds = array<i64: 32, 72>}, {pipeline_mode = #tpu.pipeline_mode<synchronous>, transform_indices = @transform_2, window_bounds = array<i64: 32, 1>}, {transform_indices = @transform_3, window_bounds = array<i64: 1, 1, 32, 288>}]} {
    %c0 = arith.constant 0 : index
    %c0_0 = arith.constant 0 : index
    %c0_1 = arith.constant 0 : index
    %c0_2 = arith.constant 0 : index
    %0 = vector.load %arg2[%c0, %c0_0, %c0_1, %c0_2] : memref<1x1x8x326xbf16, #tpu.memory_space<vmem>>, vector<1x1x8x288xbf16>
    %1 = vector.shape_cast %0 : vector<1x1x8x288xbf16> to vector<8x288xbf16>
    %c0_3 = arith.constant 0 : index
    %c0_4 = arith.constant 0 : index
    %2 = vector.load %arg6[%c0_3, %c0_4] : memref<72x288xbf16, #tpu.memory_space<vmem>>, vector<8x288xbf16>
    tpu.vector_store %arg6[%c0_3, %c0_4], %1 {strides = array<i32>} : memref<72x288xbf16, #tpu.memory_space<vmem>>, vector<8x288xbf16>,
    %c0_5 = arith.constant 0 : index
    %c0_6 = arith.constant 0 : index
    %c0_7 = arith.constant 0 : index
    %c1 = arith.constant 1 : index
    %3 = vector.load %arg2[%c0_5, %c0_6, %c0_7, %c1] : memref<1x1x8x326xbf16, #tpu.memory_space<vmem>>, vector<1x1x8x288xbf16>
    %4 = vector.shape_cast %3 : vector<1x1x8x288xbf16> to vector<8x288xbf16>
    %c8 = arith.constant 8 : index
    %c0_8 = arith.constant 0 : index
    %5 = vector.load %arg6[%c8, %c0_8] : memref<72x288xbf16, #tpu.memory_space<vmem>>, vector<8x288xbf16>
    tpu.vector_store %arg6[%c8, %c0_8], %4 {strides = array<i32>} : memref<72x288xbf16, #tpu.memory_space<vmem>>, vector<8x288xbf16>,
    %c0_9 = arith.constant 0 : index
    %c0_10 = arith.constant 0 : index
    %c0_11 = arith.constant 0 : index
    %c2 = arith.constant 2 : index
    %6 = vector.load %arg2[%c0_9, %c0_10, %c0_11, %c2] : memref<1x1x8x326xbf16, #tpu.memory_space<vmem>>, vector<1x1x8x288xbf16>
    %7 = vector.shape_cast %6 : vector<1x1x8x288xbf16> to vector<8x288xbf16>
    %c16 = arith.constant 16 : index
    %c0_12 = arith.constant 0 : index
    %8 = vector.load %arg6[%c16, %c0_12] : memref<72x288xbf16, #tpu.memory_space<vmem>>, vector<8x288xbf16>
    tpu.vector_store %arg6[%c16, %c0_12], %7 {strides = array<i32>} : memref<72x288xbf16, #tpu.memory_space<vmem>>, vector<8x288xbf16>,
    %c0_13 = arith.constant 0 : index
    %c0_14 = arith.constant 0 : index
    %c0_15 = arith.constant 0 : index
    %c18 = arith.constant 18 : index
    %9 = vector.load %arg2[%c0_13, %c0_14, %c0_15, %c18] : memref<1x1x8x326xbf16, #tpu.memory_space<vmem>>, vector<1x1x8x288xbf16>
    %10 = vector.shape_cast %9 : vector<1x1x8x288xbf16> to vector<8x288xbf16>
    %c24 = arith.constant 24 : index
    %c0_16 = arith.constant 0 : index
    %11 = vector.load %arg6[%c24, %c0_16] : memref<72x288xbf16, #tpu.memory_space<vmem>>, vector<8x288xbf16>
    tpu.vector_store %arg6[%c24, %c0_16], %10 {strides = array<i32>} : memref<72x288xbf16, #tpu.memory_space<vmem>>, vector<8x288xbf16>,
    %c0_17 = arith.constant 0 : index
    %c0_18 = arith.constant 0 : index
    %c0_19 = arith.constant 0 : index
    %c19 = arith.constant 19 : index
    %12 = vector.load %arg2[%c0_17, %c0_18, %c0_19, %c19] : memref<1x1x8x326xbf16, #tpu.memory_space<vmem>>, vector<1x1x8x288xbf16>
    %13 = vector.shape_cast %12 : vector<1x1x8x288xbf16> to vector<8x288xbf16>
    %c32 = arith.constant 32 : index
    %c0_20 = arith.constant 0 : index
    %14 = vector.load %arg6[%c32, %c0_20] : memref<72x288xbf16, #tpu.memory_space<vmem>>, vector<8x288xbf16>
    tpu.vector_store %arg6[%c32, %c0_20], %13 {strides = array<i32>} : memref<72x288xbf16, #tpu.memory_space<vmem>>, vector<8x288xbf16>,
    %c0_21 = arith.constant 0 : index
    %c0_22 = arith.constant 0 : index
    %c0_23 = arith.constant 0 : index
    %c20 = arith.constant 20 : index
    %15 = vector.load %arg2[%c0_21, %c0_22, %c0_23, %c20] : memref<1x1x8x326xbf16, #tpu.memory_space<vmem>>, vector<1x1x8x288xbf16>
    %16 = vector.shape_cast %15 : vector<1x1x8x288xbf16> to vector<8x288xbf16>
    %c40 = arith.constant 40 : index
    %c0_24 = arith.constant 0 : index
    %17 = vector.load %arg6[%c40, %c0_24] : memref<72x288xbf16, #tpu.memory_space<vmem>>, vector<8x288xbf16>
    tpu.vector_store %arg6[%c40, %c0_24], %16 {strides = array<i32>} : memref<72x288xbf16, #tpu.memory_space<vmem>>, vector<8x288xbf16>,
    %c0_25 = arith.constant 0 : index
    %c0_26 = arith.constant 0 : index
    %c0_27 = arith.constant 0 : index
    %c36 = arith.constant 36 : index
    %18 = vector.load %arg2[%c0_25, %c0_26, %c0_27, %c36] : memref<1x1x8x326xbf16, #tpu.memory_space<vmem>>, vector<1x1x8x288xbf16>
    %19 = vector.shape_cast %18 : vector<1x1x8x288xbf16> to vector<8x288xbf16>
    %c48 = arith.constant 48 : index
    %c0_28 = arith.constant 0 : index
    %20 = vector.load %arg6[%c48, %c0_28] : memref<72x288xbf16, #tpu.memory_space<vmem>>, vector<8x288xbf16>
    tpu.vector_store %arg6[%c48, %c0_28], %19 {strides = array<i32>} : memref<72x288xbf16, #tpu.memory_space<vmem>>, vector<8x288xbf16>,
    %c0_29 = arith.constant 0 : index
    %c0_30 = arith.constant 0 : index
    %c0_31 = arith.constant 0 : index
    %c37 = arith.constant 37 : index
    %21 = vector.load %arg2[%c0_29, %c0_30, %c0_31, %c37] : memref<1x1x8x326xbf16, #tpu.memory_space<vmem>>, vector<1x1x8x288xbf16>
    %22 = vector.shape_cast %21 : vector<1x1x8x288xbf16> to vector<8x288xbf16>
    %c56 = arith.constant 56 : index
    %c0_32 = arith.constant 0 : index
    %23 = vector.load %arg6[%c56, %c0_32] : memref<72x288xbf16, #tpu.memory_space<vmem>>, vector<8x288xbf16>
    tpu.vector_store %arg6[%c56, %c0_32], %22 {strides = array<i32>} : memref<72x288xbf16, #tpu.memory_space<vmem>>, vector<8x288xbf16>,
    %c0_33 = arith.constant 0 : index
    %c0_34 = arith.constant 0 : index
    %c0_35 = arith.constant 0 : index
    %c38 = arith.constant 38 : index
    %24 = vector.load %arg2[%c0_33, %c0_34, %c0_35, %c38] : memref<1x1x8x326xbf16, #tpu.memory_space<vmem>>, vector<1x1x8x288xbf16>
    %25 = vector.shape_cast %24 : vector<1x1x8x288xbf16> to vector<8x288xbf16>
    %c64 = arith.constant 64 : index
    %c0_36 = arith.constant 0 : index
    %26 = vector.load %arg6[%c64, %c0_36] : memref<72x288xbf16, #tpu.memory_space<vmem>>, vector<8x288xbf16>
    tpu.vector_store %arg6[%c64, %c0_36], %25 {strides = array<i32>} : memref<72x288xbf16, #tpu.memory_space<vmem>>, vector<8x288xbf16>,
    %c0_37 = arith.constant 0 : index
    %c0_38 = arith.constant 0 : index
    %27 = vector.load %arg3[%c0_37, %c0_38] : memref<32x72xbf16, #tpu.memory_space<vmem>>, vector<32x72xbf16>
    %c0_39 = arith.constant 0 : index
    %c0_40 = arith.constant 0 : index
    %28 = vector.load %arg6[%c0_39, %c0_40] : memref<72x288xbf16, #tpu.memory_space<vmem>>, vector<72x288xbf16>
    %cst = arith.constant dense<0.000000e+00> : vector<32x288xf32>
    %29 = tpu.matmul %27, %28, %cst {dimension_numbers = #tpu.dot_dimension_numbers<[1], [0], [0], [1], [0, 0, 1, 1], [], []>} : vector<32x72xbf16>, vector<72x288xbf16>, vector<32x288xf32> -> vector<32x288xf32>
    %c0_41 = arith.constant 0 : index
    %c0_42 = arith.constant 0 : index
    %30 = vector.load %arg4[%c0_41, %c0_42] : memref<32x1xf32, #tpu.memory_space<vmem>>, vector<32x1xf32>
    %31 = vector.broadcast %30 : vector<32x1xf32> to vector<32x288xf32>
    %32 = arith.addf %29, %31 : vector<32x288xf32>
    %cst_43 = arith.constant 0.000000e+00 : f32
    %33 = vector.broadcast %cst_43 : f32 to vector<32x288xf32>
    %34 = arith.cmpf oge, %32, %33 : vector<32x288xf32>
    %cst_44 = arith.constant 2.500000e-01 : f32
    %35 = vector.broadcast %cst_44 : f32 to vector<32x288xf32>
    %36 = arith.mulf %35, %32 : vector<32x288xf32>
    %37 = arith.select %34, %32, %36 : vector<32x288xi1>, vector<32x288xf32>
    %c0_45 = arith.constant 0 : index
    %c0_46 = arith.constant 0 : index
    %c0_47 = arith.constant 0 : index
    %c0_48 = arith.constant 0 : index
    %38 = vector.load %arg5[%c0_45, %c0_46, %c0_47, %c0_48] : memref<1x1x32x288xf32, #tpu.memory_space<vmem>>, vector<1x1x32x288xf32>
    %39 = vector.shape_cast %38 : vector<1x1x32x288xf32> to vector<32x288xf32>
    %40 = vector.shape_cast %37 : vector<32x288xf32> to vector<1x1x32x288xf32>
    tpu.vector_store %arg5[%c0_45, %c0_46, %c0_47, %c0_48], %40 {strides = array<i32>} : memref<1x1x32x288xf32, #tpu.memory_space<vmem>>, vector<1x1x32x288xf32>,
    return
  }
  func.func @transform_0(%arg0: i32, %arg1: i32) -> (i32, i32, i32, i32) {
    %c0_i32 = arith.constant 0 : i32
    %c0_i32_0 = arith.constant 0 : i32
    %c0_i32_1 = arith.constant 0 : i32
    return %arg0, %arg1, %c0_i32, %c0_i32_0 : i32, i32, i32, i32
  }
  func.func @transform_1(%arg0: i32, %arg1: i32) -> (i32, i32) {
    %c0_i32 = arith.constant 0 : i32
    %c0_i32_0 = arith.constant 0 : i32
    %c0_i32_1 = arith.constant 0 : i32
    return %c0_i32, %c0_i32_0 : i32, i32
  }
  func.func @transform_2(%arg0: i32, %arg1: i32) -> (i32, i32) {
    %c0_i32 = arith.constant 0 : i32
    %c0_i32_0 = arith.constant 0 : i32
    %c0_i32_1 = arith.constant 0 : i32
    return %c0_i32, %c0_i32_0 : i32, i32
  }
  func.func @transform_3(%arg0: i32, %arg1: i32) -> (i32, i32, i32, i32) {
    %c0_i32 = arith.constant 0 : i32
    %c0_i32_0 = arith.constant 0 : i32
    %c0_i32_1 = arith.constant 0 : i32
    return %arg0, %arg1, %c0_i32, %c0_i32_0 : i32, i32, i32, i32
  }
}

module attributes {stable_mosaic.version = 11 : i64} {
  func.func @_conv_im2col_kernel(%arg0: i32, %arg1: i32, %arg2: memref<1x1x8x1158xbf16, #tpu.memory_space<vmem>>, %arg3: memref<32x72xbf16, #tpu.memory_space<vmem>>, %arg4: memref<32x1xf32, #tpu.memory_space<vmem>>, %arg5: memref<1x1x32x1088xf32, #tpu.memory_space<vmem>>, %arg6: memref<72x1088xbf16, #tpu.memory_space<vmem>>) attributes {dimension_semantics = [#tpu.dimension_semantics<parallel>, #tpu.dimension_semantics<parallel>], iteration_bounds = array<i64: 2, 1>, scalar_prefetch = 0 : i64, scratch_operands = 1 : i64, tpu.core_type = #tpu.core_type<tc>, window_params = [{transform_indices = @transform_0, window_bounds = array<i64: 1, 1, 8, 1158>}, {pipeline_mode = #tpu.pipeline_mode<synchronous>, transform_indices = @transform_1, window_bounds = array<i64: 32, 72>}, {pipeline_mode = #tpu.pipeline_mode<synchronous>, transform_indices = @transform_2, window_bounds = array<i64: 32, 1>}, {transform_indices = @transform_3, window_bounds = array<i64: 1, 1, 32, 1088>}]} {
    %c0 = arith.constant 0 : index
    %c0_0 = arith.constant 0 : index
    %c0_1 = arith.constant 0 : index
    %c0_2 = arith.constant 0 : index
    %0 = vector.load %arg2[%c0, %c0_0, %c0_1, %c0_2] : memref<1x1x8x1158xbf16, #tpu.memory_space<vmem>>, vector<1x1x8x1088xbf16>
    %1 = vector.shape_cast %0 : vector<1x1x8x1088xbf16> to vector<8x1088xbf16>
    %c0_3 = arith.constant 0 : index
    %c0_4 = arith.constant 0 : index
    %2 = vector.load %arg6[%c0_3, %c0_4] : memref<72x1088xbf16, #tpu.memory_space<vmem>>, vector<8x1088xbf16>
    tpu.vector_store %arg6[%c0_3, %c0_4], %1 {strides = array<i32>} : memref<72x1088xbf16, #tpu.memory_space<vmem>>, vector<8x1088xbf16>,
    %c0_5 = arith.constant 0 : index
    %c0_6 = arith.constant 0 : index
    %c0_7 = arith.constant 0 : index
    %c1 = arith.constant 1 : index
    %3 = vector.load %arg2[%c0_5, %c0_6, %c0_7, %c1] : memref<1x1x8x1158xbf16, #tpu.memory_space<vmem>>, vector<1x1x8x1088xbf16>
    %4 = vector.shape_cast %3 : vector<1x1x8x1088xbf16> to vector<8x1088xbf16>
    %c8 = arith.constant 8 : index
    %c0_8 = arith.constant 0 : index
    %5 = vector.load %arg6[%c8, %c0_8] : memref<72x1088xbf16, #tpu.memory_space<vmem>>, vector<8x1088xbf16>
    tpu.vector_store %arg6[%c8, %c0_8], %4 {strides = array<i32>} : memref<72x1088xbf16, #tpu.memory_space<vmem>>, vector<8x1088xbf16>,
    %c0_9 = arith.constant 0 : index
    %c0_10 = arith.constant 0 : index
    %c0_11 = arith.constant 0 : index
    %c2 = arith.constant 2 : index
    %6 = vector.load %arg2[%c0_9, %c0_10, %c0_11, %c2] : memref<1x1x8x1158xbf16, #tpu.memory_space<vmem>>, vector<1x1x8x1088xbf16>
    %7 = vector.shape_cast %6 : vector<1x1x8x1088xbf16> to vector<8x1088xbf16>
    %c16 = arith.constant 16 : index
    %c0_12 = arith.constant 0 : index
    %8 = vector.load %arg6[%c16, %c0_12] : memref<72x1088xbf16, #tpu.memory_space<vmem>>, vector<8x1088xbf16>
    tpu.vector_store %arg6[%c16, %c0_12], %7 {strides = array<i32>} : memref<72x1088xbf16, #tpu.memory_space<vmem>>, vector<8x1088xbf16>,
    %c0_13 = arith.constant 0 : index
    %c0_14 = arith.constant 0 : index
    %c0_15 = arith.constant 0 : index
    %c34 = arith.constant 34 : index
    %9 = vector.load %arg2[%c0_13, %c0_14, %c0_15, %c34] : memref<1x1x8x1158xbf16, #tpu.memory_space<vmem>>, vector<1x1x8x1088xbf16>
    %10 = vector.shape_cast %9 : vector<1x1x8x1088xbf16> to vector<8x1088xbf16>
    %c24 = arith.constant 24 : index
    %c0_16 = arith.constant 0 : index
    %11 = vector.load %arg6[%c24, %c0_16] : memref<72x1088xbf16, #tpu.memory_space<vmem>>, vector<8x1088xbf16>
    tpu.vector_store %arg6[%c24, %c0_16], %10 {strides = array<i32>} : memref<72x1088xbf16, #tpu.memory_space<vmem>>, vector<8x1088xbf16>,
    %c0_17 = arith.constant 0 : index
    %c0_18 = arith.constant 0 : index
    %c0_19 = arith.constant 0 : index
    %c35 = arith.constant 35 : index
    %12 = vector.load %arg2[%c0_17, %c0_18, %c0_19, %c35] : memref<1x1x8x1158xbf16, #tpu.memory_space<vmem>>, vector<1x1x8x1088xbf16>
    %13 = vector.shape_cast %12 : vector<1x1x8x1088xbf16> to vector<8x1088xbf16>
    %c32 = arith.constant 32 : index
    %c0_20 = arith.constant 0 : index
    %14 = vector.load %arg6[%c32, %c0_20] : memref<72x1088xbf16, #tpu.memory_space<vmem>>, vector<8x1088xbf16>
    tpu.vector_store %arg6[%c32, %c0_20], %13 {strides = array<i32>} : memref<72x1088xbf16, #tpu.memory_space<vmem>>, vector<8x1088xbf16>,
    %c0_21 = arith.constant 0 : index
    %c0_22 = arith.constant 0 : index
    %c0_23 = arith.constant 0 : index
    %c36 = arith.constant 36 : index
    %15 = vector.load %arg2[%c0_21, %c0_22, %c0_23, %c36] : memref<1x1x8x1158xbf16, #tpu.memory_space<vmem>>, vector<1x1x8x1088xbf16>
    %16 = vector.shape_cast %15 : vector<1x1x8x1088xbf16> to vector<8x1088xbf16>
    %c40 = arith.constant 40 : index
    %c0_24 = arith.constant 0 : index
    %17 = vector.load %arg6[%c40, %c0_24] : memref<72x1088xbf16, #tpu.memory_space<vmem>>, vector<8x1088xbf16>
    tpu.vector_store %arg6[%c40, %c0_24], %16 {strides = array<i32>} : memref<72x1088xbf16, #tpu.memory_space<vmem>>, vector<8x1088xbf16>,
    %c0_25 = arith.constant 0 : index
    %c0_26 = arith.constant 0 : index
    %c0_27 = arith.constant 0 : index
    %c68 = arith.constant 68 : index
    %18 = vector.load %arg2[%c0_25, %c0_26, %c0_27, %c68] : memref<1x1x8x1158xbf16, #tpu.memory_space<vmem>>, vector<1x1x8x1088xbf16>
    %19 = vector.shape_cast %18 : vector<1x1x8x1088xbf16> to vector<8x1088xbf16>
    %c48 = arith.constant 48 : index
    %c0_28 = arith.constant 0 : index
    %20 = vector.load %arg6[%c48, %c0_28] : memref<72x1088xbf16, #tpu.memory_space<vmem>>, vector<8x1088xbf16>
    tpu.vector_store %arg6[%c48, %c0_28], %19 {strides = array<i32>} : memref<72x1088xbf16, #tpu.memory_space<vmem>>, vector<8x1088xbf16>,
    %c0_29 = arith.constant 0 : index
    %c0_30 = arith.constant 0 : index
    %c0_31 = arith.constant 0 : index
    %c69 = arith.constant 69 : index
    %21 = vector.load %arg2[%c0_29, %c0_30, %c0_31, %c69] : memref<1x1x8x1158xbf16, #tpu.memory_space<vmem>>, vector<1x1x8x1088xbf16>
    %22 = vector.shape_cast %21 : vector<1x1x8x1088xbf16> to vector<8x1088xbf16>
    %c56 = arith.constant 56 : index
    %c0_32 = arith.constant 0 : index
    %23 = vector.load %arg6[%c56, %c0_32] : memref<72x1088xbf16, #tpu.memory_space<vmem>>, vector<8x1088xbf16>
    tpu.vector_store %arg6[%c56, %c0_32], %22 {strides = array<i32>} : memref<72x1088xbf16, #tpu.memory_space<vmem>>, vector<8x1088xbf16>,
    %c0_33 = arith.constant 0 : index
    %c0_34 = arith.constant 0 : index
    %c0_35 = arith.constant 0 : index
    %c70 = arith.constant 70 : index
    %24 = vector.load %arg2[%c0_33, %c0_34, %c0_35, %c70] : memref<1x1x8x1158xbf16, #tpu.memory_space<vmem>>, vector<1x1x8x1088xbf16>
    %25 = vector.shape_cast %24 : vector<1x1x8x1088xbf16> to vector<8x1088xbf16>
    %c64 = arith.constant 64 : index
    %c0_36 = arith.constant 0 : index
    %26 = vector.load %arg6[%c64, %c0_36] : memref<72x1088xbf16, #tpu.memory_space<vmem>>, vector<8x1088xbf16>
    tpu.vector_store %arg6[%c64, %c0_36], %25 {strides = array<i32>} : memref<72x1088xbf16, #tpu.memory_space<vmem>>, vector<8x1088xbf16>,
    %c0_37 = arith.constant 0 : index
    %c0_38 = arith.constant 0 : index
    %27 = vector.load %arg3[%c0_37, %c0_38] : memref<32x72xbf16, #tpu.memory_space<vmem>>, vector<32x72xbf16>
    %c0_39 = arith.constant 0 : index
    %c0_40 = arith.constant 0 : index
    %28 = vector.load %arg6[%c0_39, %c0_40] : memref<72x1088xbf16, #tpu.memory_space<vmem>>, vector<72x1088xbf16>
    %cst = arith.constant dense<0.000000e+00> : vector<32x1088xf32>
    %29 = tpu.matmul %27, %28, %cst {dimension_numbers = #tpu.dot_dimension_numbers<[1], [0], [0], [1], [0, 0, 1, 1], [], []>} : vector<32x72xbf16>, vector<72x1088xbf16>, vector<32x1088xf32> -> vector<32x1088xf32>
    %c0_41 = arith.constant 0 : index
    %c0_42 = arith.constant 0 : index
    %30 = vector.load %arg4[%c0_41, %c0_42] : memref<32x1xf32, #tpu.memory_space<vmem>>, vector<32x1xf32>
    %31 = vector.broadcast %30 : vector<32x1xf32> to vector<32x1088xf32>
    %32 = arith.addf %29, %31 : vector<32x1088xf32>
    %cst_43 = arith.constant 0.000000e+00 : f32
    %33 = vector.broadcast %cst_43 : f32 to vector<32x1088xf32>
    %34 = arith.cmpf oge, %32, %33 : vector<32x1088xf32>
    %cst_44 = arith.constant 2.500000e-01 : f32
    %35 = vector.broadcast %cst_44 : f32 to vector<32x1088xf32>
    %36 = arith.mulf %35, %32 : vector<32x1088xf32>
    %37 = arith.select %34, %32, %36 : vector<32x1088xi1>, vector<32x1088xf32>
    %c0_45 = arith.constant 0 : index
    %c0_46 = arith.constant 0 : index
    %c0_47 = arith.constant 0 : index
    %c0_48 = arith.constant 0 : index
    %38 = vector.load %arg5[%c0_45, %c0_46, %c0_47, %c0_48] : memref<1x1x32x1088xf32, #tpu.memory_space<vmem>>, vector<1x1x32x1088xf32>
    %39 = vector.shape_cast %38 : vector<1x1x32x1088xf32> to vector<32x1088xf32>
    %40 = vector.shape_cast %37 : vector<32x1088xf32> to vector<1x1x32x1088xf32>
    tpu.vector_store %arg5[%c0_45, %c0_46, %c0_47, %c0_48], %40 {strides = array<i32>} : memref<1x1x32x1088xf32, #tpu.memory_space<vmem>>, vector<1x1x32x1088xf32>,
    return
  }
  func.func @transform_0(%arg0: i32, %arg1: i32) -> (i32, i32, i32, i32) {
    %c0_i32 = arith.constant 0 : i32
    %c0_i32_0 = arith.constant 0 : i32
    %c0_i32_1 = arith.constant 0 : i32
    return %arg0, %arg1, %c0_i32, %c0_i32_0 : i32, i32, i32, i32
  }
  func.func @transform_1(%arg0: i32, %arg1: i32) -> (i32, i32) {
    %c0_i32 = arith.constant 0 : i32
    %c0_i32_0 = arith.constant 0 : i32
    %c0_i32_1 = arith.constant 0 : i32
    return %c0_i32, %c0_i32_0 : i32, i32
  }
  func.func @transform_2(%arg0: i32, %arg1: i32) -> (i32, i32) {
    %c0_i32 = arith.constant 0 : i32
    %c0_i32_0 = arith.constant 0 : i32
    %c0_i32_1 = arith.constant 0 : i32
    return %c0_i32, %c0_i32_0 : i32, i32
  }
  func.func @transform_3(%arg0: i32, %arg1: i32) -> (i32, i32, i32, i32) {
    %c0_i32 = arith.constant 0 : i32
    %c0_i32_0 = arith.constant 0 : i32
    %c0_i32_1 = arith.constant 0 : i32
    return %arg0, %arg1, %c0_i32, %c0_i32_0 : i32, i32, i32, i32
  }
}

module attributes {stable_mosaic.version = 11 : i64} {
  func.func @_conv_im2col_kernel(%arg0: i32, %arg1: i32, %arg2: memref<1x1x8x2246xbf16, #tpu.memory_space<vmem>>, %arg3: memref<2x72xbf16, #tpu.memory_space<vmem>>, %arg4: memref<2x1xf32, #tpu.memory_space<vmem>>, %arg5: memref<1x1x2x2112xf32, #tpu.memory_space<vmem>>, %arg6: memref<72x2112xbf16, #tpu.memory_space<vmem>>) attributes {dimension_semantics = [#tpu.dimension_semantics<parallel>, #tpu.dimension_semantics<parallel>], iteration_bounds = array<i64: 2, 2>, scalar_prefetch = 0 : i64, scratch_operands = 1 : i64, tpu.core_type = #tpu.core_type<tc>, window_params = [{transform_indices = @transform_0, window_bounds = array<i64: 1, 1, 8, 2246>}, {pipeline_mode = #tpu.pipeline_mode<synchronous>, transform_indices = @transform_1, window_bounds = array<i64: 2, 72>}, {pipeline_mode = #tpu.pipeline_mode<synchronous>, transform_indices = @transform_2, window_bounds = array<i64: 2, 1>}, {transform_indices = @transform_3, window_bounds = array<i64: 1, 1, 2, 2112>}]} {
    %c0 = arith.constant 0 : index
    %c0_0 = arith.constant 0 : index
    %c0_1 = arith.constant 0 : index
    %c0_2 = arith.constant 0 : index
    %0 = vector.load %arg2[%c0, %c0_0, %c0_1, %c0_2] : memref<1x1x8x2246xbf16, #tpu.memory_space<vmem>>, vector<1x1x8x2112xbf16>
    %1 = vector.shape_cast %0 : vector<1x1x8x2112xbf16> to vector<8x2112xbf16>
    %c0_3 = arith.constant 0 : index
    %c0_4 = arith.constant 0 : index
    %2 = vector.load %arg6[%c0_3, %c0_4] : memref<72x2112xbf16, #tpu.memory_space<vmem>>, vector<8x2112xbf16>
    tpu.vector_store %arg6[%c0_3, %c0_4], %1 {strides = array<i32>} : memref<72x2112xbf16, #tpu.memory_space<vmem>>, vector<8x2112xbf16>,
    %c0_5 = arith.constant 0 : index
    %c0_6 = arith.constant 0 : index
    %c0_7 = arith.constant 0 : index
    %c1 = arith.constant 1 : index
    %3 = vector.load %arg2[%c0_5, %c0_6, %c0_7, %c1] : memref<1x1x8x2246xbf16, #tpu.memory_space<vmem>>, vector<1x1x8x2112xbf16>
    %4 = vector.shape_cast %3 : vector<1x1x8x2112xbf16> to vector<8x2112xbf16>
    %c8 = arith.constant 8 : index
    %c0_8 = arith.constant 0 : index
    %5 = vector.load %arg6[%c8, %c0_8] : memref<72x2112xbf16, #tpu.memory_space<vmem>>, vector<8x2112xbf16>
    tpu.vector_store %arg6[%c8, %c0_8], %4 {strides = array<i32>} : memref<72x2112xbf16, #tpu.memory_space<vmem>>, vector<8x2112xbf16>,
    %c0_9 = arith.constant 0 : index
    %c0_10 = arith.constant 0 : index
    %c0_11 = arith.constant 0 : index
    %c2 = arith.constant 2 : index
    %6 = vector.load %arg2[%c0_9, %c0_10, %c0_11, %c2] : memref<1x1x8x2246xbf16, #tpu.memory_space<vmem>>, vector<1x1x8x2112xbf16>
    %7 = vector.shape_cast %6 : vector<1x1x8x2112xbf16> to vector<8x2112xbf16>
    %c16 = arith.constant 16 : index
    %c0_12 = arith.constant 0 : index
    %8 = vector.load %arg6[%c16, %c0_12] : memref<72x2112xbf16, #tpu.memory_space<vmem>>, vector<8x2112xbf16>
    tpu.vector_store %arg6[%c16, %c0_12], %7 {strides = array<i32>} : memref<72x2112xbf16, #tpu.memory_space<vmem>>, vector<8x2112xbf16>,
    %c0_13 = arith.constant 0 : index
    %c0_14 = arith.constant 0 : index
    %c0_15 = arith.constant 0 : index
    %c66 = arith.constant 66 : index
    %9 = vector.load %arg2[%c0_13, %c0_14, %c0_15, %c66] : memref<1x1x8x2246xbf16, #tpu.memory_space<vmem>>, vector<1x1x8x2112xbf16>
    %10 = vector.shape_cast %9 : vector<1x1x8x2112xbf16> to vector<8x2112xbf16>
    %c24 = arith.constant 24 : index
    %c0_16 = arith.constant 0 : index
    %11 = vector.load %arg6[%c24, %c0_16] : memref<72x2112xbf16, #tpu.memory_space<vmem>>, vector<8x2112xbf16>
    tpu.vector_store %arg6[%c24, %c0_16], %10 {strides = array<i32>} : memref<72x2112xbf16, #tpu.memory_space<vmem>>, vector<8x2112xbf16>,
    %c0_17 = arith.constant 0 : index
    %c0_18 = arith.constant 0 : index
    %c0_19 = arith.constant 0 : index
    %c67 = arith.constant 67 : index
    %12 = vector.load %arg2[%c0_17, %c0_18, %c0_19, %c67] : memref<1x1x8x2246xbf16, #tpu.memory_space<vmem>>, vector<1x1x8x2112xbf16>
    %13 = vector.shape_cast %12 : vector<1x1x8x2112xbf16> to vector<8x2112xbf16>
    %c32 = arith.constant 32 : index
    %c0_20 = arith.constant 0 : index
    %14 = vector.load %arg6[%c32, %c0_20] : memref<72x2112xbf16, #tpu.memory_space<vmem>>, vector<8x2112xbf16>
    tpu.vector_store %arg6[%c32, %c0_20], %13 {strides = array<i32>} : memref<72x2112xbf16, #tpu.memory_space<vmem>>, vector<8x2112xbf16>,
    %c0_21 = arith.constant 0 : index
    %c0_22 = arith.constant 0 : index
    %c0_23 = arith.constant 0 : index
    %c68 = arith.constant 68 : index
    %15 = vector.load %arg2[%c0_21, %c0_22, %c0_23, %c68] : memref<1x1x8x2246xbf16, #tpu.memory_space<vmem>>, vector<1x1x8x2112xbf16>
    %16 = vector.shape_cast %15 : vector<1x1x8x2112xbf16> to vector<8x2112xbf16>
    %c40 = arith.constant 40 : index
    %c0_24 = arith.constant 0 : index
    %17 = vector.load %arg6[%c40, %c0_24] : memref<72x2112xbf16, #tpu.memory_space<vmem>>, vector<8x2112xbf16>
    tpu.vector_store %arg6[%c40, %c0_24], %16 {strides = array<i32>} : memref<72x2112xbf16, #tpu.memory_space<vmem>>, vector<8x2112xbf16>,
    %c0_25 = arith.constant 0 : index
    %c0_26 = arith.constant 0 : index
    %c0_27 = arith.constant 0 : index
    %c132 = arith.constant 132 : index
    %18 = vector.load %arg2[%c0_25, %c0_26, %c0_27, %c132] : memref<1x1x8x2246xbf16, #tpu.memory_space<vmem>>, vector<1x1x8x2112xbf16>
    %19 = vector.shape_cast %18 : vector<1x1x8x2112xbf16> to vector<8x2112xbf16>
    %c48 = arith.constant 48 : index
    %c0_28 = arith.constant 0 : index
    %20 = vector.load %arg6[%c48, %c0_28] : memref<72x2112xbf16, #tpu.memory_space<vmem>>, vector<8x2112xbf16>
    tpu.vector_store %arg6[%c48, %c0_28], %19 {strides = array<i32>} : memref<72x2112xbf16, #tpu.memory_space<vmem>>, vector<8x2112xbf16>,
    %c0_29 = arith.constant 0 : index
    %c0_30 = arith.constant 0 : index
    %c0_31 = arith.constant 0 : index
    %c133 = arith.constant 133 : index
    %21 = vector.load %arg2[%c0_29, %c0_30, %c0_31, %c133] : memref<1x1x8x2246xbf16, #tpu.memory_space<vmem>>, vector<1x1x8x2112xbf16>
    %22 = vector.shape_cast %21 : vector<1x1x8x2112xbf16> to vector<8x2112xbf16>
    %c56 = arith.constant 56 : index
    %c0_32 = arith.constant 0 : index
    %23 = vector.load %arg6[%c56, %c0_32] : memref<72x2112xbf16, #tpu.memory_space<vmem>>, vector<8x2112xbf16>
    tpu.vector_store %arg6[%c56, %c0_32], %22 {strides = array<i32>} : memref<72x2112xbf16, #tpu.memory_space<vmem>>, vector<8x2112xbf16>,
    %c0_33 = arith.constant 0 : index
    %c0_34 = arith.constant 0 : index
    %c0_35 = arith.constant 0 : index
    %c134 = arith.constant 134 : index
    %24 = vector.load %arg2[%c0_33, %c0_34, %c0_35, %c134] : memref<1x1x8x2246xbf16, #tpu.memory_space<vmem>>, vector<1x1x8x2112xbf16>
    %25 = vector.shape_cast %24 : vector<1x1x8x2112xbf16> to vector<8x2112xbf16>
    %c64 = arith.constant 64 : index
    %c0_36 = arith.constant 0 : index
    %26 = vector.load %arg6[%c64, %c0_36] : memref<72x2112xbf16, #tpu.memory_space<vmem>>, vector<8x2112xbf16>
    tpu.vector_store %arg6[%c64, %c0_36], %25 {strides = array<i32>} : memref<72x2112xbf16, #tpu.memory_space<vmem>>, vector<8x2112xbf16>,
    %c0_37 = arith.constant 0 : index
    %c0_38 = arith.constant 0 : index
    %27 = vector.load %arg3[%c0_37, %c0_38] : memref<2x72xbf16, #tpu.memory_space<vmem>>, vector<2x72xbf16>
    %c0_39 = arith.constant 0 : index
    %c0_40 = arith.constant 0 : index
    %28 = vector.load %arg6[%c0_39, %c0_40] : memref<72x2112xbf16, #tpu.memory_space<vmem>>, vector<72x2112xbf16>
    %cst = arith.constant dense<0.000000e+00> : vector<2x2112xf32>
    %29 = tpu.matmul %27, %28, %cst {dimension_numbers = #tpu.dot_dimension_numbers<[1], [0], [0], [1], [0, 0, 1, 1], [], []>} : vector<2x72xbf16>, vector<72x2112xbf16>, vector<2x2112xf32> -> vector<2x2112xf32>
    %c0_41 = arith.constant 0 : index
    %c0_42 = arith.constant 0 : index
    %30 = vector.load %arg4[%c0_41, %c0_42] : memref<2x1xf32, #tpu.memory_space<vmem>>, vector<2x1xf32>
    %31 = vector.broadcast %30 : vector<2x1xf32> to vector<2x2112xf32>
    %32 = arith.addf %29, %31 : vector<2x2112xf32>
    %c0_43 = arith.constant 0 : index
    %c0_44 = arith.constant 0 : index
    %c0_45 = arith.constant 0 : index
    %c0_46 = arith.constant 0 : index
    %33 = vector.load %arg5[%c0_43, %c0_44, %c0_45, %c0_46] : memref<1x1x2x2112xf32, #tpu.memory_space<vmem>>, vector<1x1x2x2112xf32>
    %34 = vector.shape_cast %33 : vector<1x1x2x2112xf32> to vector<2x2112xf32>
    %35 = vector.shape_cast %32 : vector<2x2112xf32> to vector<1x1x2x2112xf32>
    tpu.vector_store %arg5[%c0_43, %c0_44, %c0_45, %c0_46], %35 {strides = array<i32>} : memref<1x1x2x2112xf32, #tpu.memory_space<vmem>>, vector<1x1x2x2112xf32>,
    return
  }
  func.func @transform_0(%arg0: i32, %arg1: i32) -> (i32, i32, i32, i32) {
    %c0_i32 = arith.constant 0 : i32
    %c0_i32_0 = arith.constant 0 : i32
    %c0_i32_1 = arith.constant 0 : i32
    return %arg0, %arg1, %c0_i32, %c0_i32_0 : i32, i32, i32, i32
  }
  func.func @transform_1(%arg0: i32, %arg1: i32) -> (i32, i32) {
    %c0_i32 = arith.constant 0 : i32
    %c0_i32_0 = arith.constant 0 : i32
    %c0_i32_1 = arith.constant 0 : i32
    return %c0_i32, %c0_i32_0 : i32, i32
  }
  func.func @transform_2(%arg0: i32, %arg1: i32) -> (i32, i32) {
    %c0_i32 = arith.constant 0 : i32
    %c0_i32_0 = arith.constant 0 : i32
    %c0_i32_1 = arith.constant 0 : i32
    return %c0_i32, %c0_i32_0 : i32, i32
  }
  func.func @transform_3(%arg0: i32, %arg1: i32) -> (i32, i32, i32, i32) {
    %c0_i32 = arith.constant 0 : i32
    %c0_i32_0 = arith.constant 0 : i32
    %c0_i32_1 = arith.constant 0 : i32
    return %arg0, %arg1, %c0_i32, %c0_i32_0 : i32, i32, i32, i32
  }
}

</mosaic_0001>

<bundles_post_ra>
// kernel: _lambda_.3
= control target key start
LH: loop header
LB: loop body
LE: loop exit
PB: predicated region body
PF: predicated region fallthrough
CT: control target
= control target key end

     0   :  { %8 = vsyncpa [#allocation4], 0  ;;  %s964_s12 = smov 0   ;;  %s966_s13 = smov 0   ;;  %s1115_s0 = inlined_call_operand.vmem [shape: bf16[2,1,8,326], index: 0, kind: input, shape index: {}]   ;;  %s1116_s1 = inlined_call_operand.hbm [shape: bf16[32,72], index: 1, kind: input, shape index: {}]   ;;  %s1117_s2 = inlined_call_operand.vmem [shape: f32[32,1], index: 2, kind: input, shape index: {}]   ;;  %s1118_s3 = inlined_call_operand.vmem [shape: f32[2,1,32,288], index: 3, kind: output, shape index: {}]  }
   0x1   :  { %s968_s14 = smov 0  }
   0x2 LB: > { %s766_s15 = sadd.s32 4294967295, %s930_s14   ;;  %s26_s16 = sadd.s32 1, %s926_s13  ;;  %s930_s14 = sphi %s968_s14, %s14_s14   ;;  %s926_s13 = sphi %s966_s13, %s1122_s13   ;;  %s922_s12 = sphi %s964_s12, %s1121_s12  }
   0x3   : > { %p28_p0 = scmp.ge.s32.totalorder %s26_s16, 2  ;;  %p768_p1 = scmp.ge.s32.totalorder %s930_s14, 1 }
   0x4   : > { %p129_p2 = scmp.lt.s32.totalorder %s930_s14, 3  ;;  %p989_p4 = scmp.eq.s32.totalorder %s766_s15, 0 }
   0x5   : > { %s1124_s16 = smov (%p28_p0, %s26_s16), 0  ;;  %s932_s19 = smov [#allocation3]  }
   0x6   : > { %p985_p3 = pnand %p768_p1, %p129_p2  ;;  %s141_s20 = sshll.u32 %s932_s19, 4  ;;  %s142_s20 = int_to_ptr.vmem [resolvable:$true] %s141_s20 }
   0x7   : > { %s889_s21 = scalar_lea.vmem %s142_s20, 256  ;;  %p897_p11 = scmp.lt.s32.totalorder %s142_s20, %s142_s20 }
   0x8   : > { %p827_p5 = pneg %p985_p3  ;;  %p890_p8 = scmp.ne.s32.totalorder %s142_s20, %s889_s21 }
   0x9   : > { %p898_p12 = scmp.lt.s32.totalorder %s889_s21, %s889_s21 }
   0xa   : > { %p828_p6 = pnand %p989_p4, %p827_p5 }
   0xb   : > { %p899_p13 = por %p898_p12, %p897_p11 }
   0xc   : > { %p880_p7 = pneg %p828_p6 }
   0xe   : > { %p892_p9 = pnand %p890_p8, %p880_p7 }
  0x10   : > { %p893_p10 = pneg %p892_p9 }
  0x12   : > { %p900_p0 = pnand %p899_p13, %p893_p10 }
  0x14   : > { %903 = shalt.err (!%p900_p0)
}
  0x15   : > { %s933_s22 = smov 64   ;;  %s934_s23 = smov 4  }
  0x16   : > { %830 = dma.hbm_to_vmem [thread:$0]  (!%p828_p6), %s1116_s1, 256, %s142_s20, [#allocation4], %s933_s22, %s933_s22, %s934_s23  }
  0x17   : > { %172 = sbr.rel (%p985_p3) target bundleno = 402 (0x192), region = 32 }
  0x1c   : > { %917 = dma.done.wait (%p989_p4), [#allocation4], 256  }
  0x1d   : > { %919 = vsyncadd (%p989_p4), [#allocation4], 4294967040  ;;  %p204_p1 = scmp.lt.s32.totalorder %s922_s12, 1  ;;  %s935_s30 = smov 90   ;;  %vm226_vm0 = vcmask 257024   ;;  %v1034_v9 = vld [vmem:[#allocation3] sm:$0xff]  }
  0x1e   : > { %s936_s4 = smov 92   ;;  %s937_s5 = smov 91   ;;  %vm493_vm1 = vcmask 588800   ;;  %v942_v11 = vmov 0   ;;  %v387_v12 = vld [vmem:[%s1117_s2] sm:$0xff]  ;;  %v388_v13 = vld [vmem:[%s1117_s2 + $0x8] sm:$0xff] }
  0x1f   : > { %s1126_s12 = smov (!%p204_p1, %s922_s12), 1  ;;  %s938_s6 = smov 109   ;;  %542 = vmatprep.mubr.bf16.mxu0 %v942_v11  ;;  %816 = vmatprep.mubr.msk.bf16.mxu1 %vm493_vm1, %v1034_v9  ;;  %v389_v14 = vld [vmem:[%s1117_s2 + $0x10] sm:$0xff]  ;;  %v390_v15 = vld [vmem:[%s1117_s2 + $0x18] sm:$0xff]  ;;  %vm238_vm2 = vcmask 1043456   ;;  %vm359_vm3 = vcmask 736256  }
  0x20   : > { %s821_s26 = smul.u32 12, %s1126_s12  ;;  %s939_s7 = smov 108   ;;  %869 = vset.pattern.permute.xlu0 %v942_v11  ;;  %870 = vset.pattern.permute.xlu1 %v942_v11  ;;  %vm325_vm4 = vcmask 752640   ;;  %vm342_vm5 = vcmask 744448   ;;  %vm291_vm6 = vcmask 891904   ;;  %vm308_vm7 = vcmask 883712  }
  0x21   : > { %s940_s8 = smov 126   ;;  %s941_s9 = smov 110   ;;  %vm257_vm8 = vcmask 1031168   ;;  %vm274_vm9 = vcmask 900096   ;;  %vm240_vm10 = vcmask 1039360   ;;  %vm650_vm13 = vcmask 261120  }
  0x22   : > { %s1014_s29 = scalar_lea.vmem %s1115_s0, %s821_s26  ;;  %s943_s10 = smov 127  }
  0x23   : > { %v1017_v0 = vld [vmem:[%s1014_s29] sm:$0xff]  ;;  %v349_v1 = vld [vmem:[%s1014_s29 + $0x8] sm:$0xf]  ;;  %s822_s23 = smul.u32 96, %s1126_s12 }
  0x24   : > { %352 = vrot.lane.b32.xlu0 %v1017_v0, %s935_s30  ;;  %318 = vrot.lane.b32.xlu1 %v1017_v0, %s936_s4  ;;  %v315_v2 = vld [vmem:[%s1014_s29 + $0x8] sm:$0xf] }
  0x25   : > { %v332_v3 = vld [vmem:[%s1014_s29 + $0x8] sm:$0xf]  ;;  %s1088_s26 = scalar_lea.vmem %s1118_s3, %s822_s23 }
  0x26   : > { %v281_v4 = vld [vmem:[%s1014_s29 + $0x8] sm:$0xf] }
  0x27   : > { %v298_v5 = vld [vmem:[%s1014_s29 + $0x8] sm:$0xf] }
  0x28   : > { %354 = vrot.lane.b32.xlu0 %v349_v1, %s935_s30  ;;  %320 = vrot.lane.b32.xlu1 %v315_v2, %s936_s4  ;;  %v224_v6 = vld [vmem:[%s1014_s29 + $0x8] sm:$0xf] }
  0x29   : > { %227 = vst.msk [vmem:[#allocation2 + $0x8] sm:$0xf] %vm226_vm0, %v224_v6  ;;  %v247_v7 = vld [vmem:[%s1014_s29 + $0x8] sm:$0xf] }
  0x2a   : > { %v264_v8 = vld [vmem:[%s1014_s29 + $0x8] sm:$0xf] }
  0x2b   : > { %v229_v10 = vld [vmem:[%s1014_s29 + $0x8] sm:$0xf] }
  0x2c   : > { %335 = vrot.lane.b32.xlu0 %v1017_v0, %s937_s5  ;;  %337 = vrot.lane.b32.xlu1 %v332_v3, %s937_s5 }
  0x30   : > { %286 = vrot.lane.b32.xlu1 %v281_v4, %s938_s6  ;;  %284 = vrot.lane.b32.xlu0 %v1017_v0, %s938_s6 }
  0x34   : > { %303 = vrot.lane.b32.xlu1 %v298_v5, %s939_s7  ;;  %301 = vrot.lane.b32.xlu0 %v1017_v0, %s939_s7 }
  0x38   : > { %252 = vrot.lane.b32.xlu1 %v247_v7, %s940_s8  ;;  %250 = vrot.lane.b32.xlu0 %v1017_v0, %s940_s8 }
  0x3c   : > { %269 = vrot.lane.b32.xlu1 %v264_v8, %s941_s9  ;;  %267 = vrot.lane.b32.xlu0 %v1017_v0, %s941_s9 }
  0x40   : > { %234 = vrot.lane.b32.xlu1 %v229_v10, %s943_s10  ;;  %232 = vrot.lane.b32.xlu0 %v1017_v0, %s943_s10 }
  0x44   : > { %393 = vperm.xlu0 %869, %v387_v12   ;;  %398 = vperm.xlu1 %870, %v388_v13  }
  0x48   : > { %403 = vperm.xlu1 %870, %v389_v14   ;;  %408 = vperm.xlu0 %869, %v390_v15  }
  0x96   : > { %v353_v16 = vpop.permute.xlu0 %352  ;;  %v319_v17 = vpop.permute.xlu1 %318 }
  0x97   : > { %v356_v20 = vrot.slane %v353_v16, 4  ;;  %v322_v21 = vrot.slane %v319_v17, 4 }
  0x9a   : > { %v355_v18 = vpop.permute.xlu0 %354  ;;  %v321_v19 = vpop.permute.xlu1 %320 }
  0x9b   : > { %v357_v22 = vrot.slane %v355_v18, 4  ;;  %364 = vst.msk [vmem:[#allocation2 + $0x68] sm:$0xf] %vm226_vm0, %v355_v18  ;;  %v323_v23 = vrot.slane %v321_v19, 4  ;;  %330 = vst.msk [vmem:[#allocation2 + $0x50] sm:$0xf] %vm226_vm0, %v321_v19 }
  0x9d   : > { %v358_v24 = vsel %vm238_vm2, %v356_v20, %v357_v22  ;;  %v324_v25 = vsel %vm238_vm2, %v322_v21, %v323_v23  ;;  %v877_v20 = vld [vmem:[#allocation3 + $0x8] sm:$0xff]  }
  0x9e   : > { %v360_v26 = vsel %vm359_vm3, %v353_v16, %v358_v24  ;;  %v326_v27 = vsel %vm325_vm4, %v319_v17, %v324_v25  ;;  %v336_v28 = vpop.permute.xlu0 %335  ;;  %v338_v29 = vpop.permute.xlu1 %337 }
  0x9f   : > { %v339_v30 = vrot.slane %v336_v28, 4  ;;  %v340_v31 = vrot.slane %v338_v29, 4  ;;  %347 = vst.msk [vmem:[#allocation2 + $0x5c] sm:$0xf] %vm226_vm0, %v338_v29  ;;  %v790_v32 = vcombine.high %v360_v26, %v360_v26  ;;  %v789_v33 = vcombine.low %v360_v26, %v360_v26 }
  0xa1   : > { %v341_v34 = vsel %vm238_vm2, %v339_v30, %v340_v31  ;;  %792 = vmatprep.subr.msk.bf16.mxu0 %vm238_vm2, %v790_v32  ;;  %v502_v35 = vsel %vm238_vm2, %v789_v33, 0 }
  0xa2   : > { %v343_v36 = vsel %vm342_vm5, %v336_v28, %v341_v34  ;;  %v287_v37 = vpop.permute.xlu1 %286  ;;  %v285_v38 = vpop.permute.xlu0 %284  ;;  %v871_v39 = vld [vmem:[#allocation2 + $0x68] ss:$0 sps:$4 sm:$0xff]   ;;  %517 = vmatpush1.bf16.msra.mxu0 %v502_v35 }
  0xa3   : > { %v289_v40 = vrot.slane %v287_v37, 4  ;;  %296 = vst.msk [vmem:[#allocation2 + $0x38] sm:$0xf] %vm226_vm0, %v287_v37  ;;  %v288_v41 = vrot.slane %v285_v38, 4  ;;  %v787_v42 = vcombine.high %v326_v27, %v343_v36  ;;  %v786_v43 = vcombine.low %v326_v27, %v343_v36  ;;  %820 = vmatprep.subr.msk.bf16.mxu1 %vm238_vm2, %v871_v39 }
  0xa4   : > { %v508_v44 = vsel %vm238_vm2, %v871_v39, 0 }
  0xa5   : > { %v290_v45 = vsel %vm238_vm2, %v288_v41, %v289_v40  ;;  %807 = vmatpush3.bf16.msra.mxu1 %v508_v44  ;;  %518 = vmatprep.subr.bf16.mxu0 %v787_v42 }
  0xa6   : > { %v292_v46 = vsel %vm291_vm6, %v285_v38, %v290_v45  ;;  %v304_v47 = vpop.permute.xlu1 %303  ;;  %v302_v48 = vpop.permute.xlu0 %301  ;;  %v872_v49 = vld [vmem:[#allocation2 + $0x50] ss:$12 sps:$4 sm:$0xff]   ;;  %519 = vmatpush1.bf16.msra.mxu0 %v786_v43 }
  0xa7   : > { %v306_v50 = vrot.slane %v304_v47, 4  ;;  %313 = vst.msk [vmem:[#allocation2 + $0x44] sm:$0xf] %vm226_vm0, %v304_v47  ;;  %v305_v51 = vrot.slane %v302_v48, 4  ;;  %808 = vmatprep.subr.bf16.mxu1 %v872_v49 }
  0xa9   : > { %v307_v52 = vsel %vm238_vm2, %v305_v51, %v306_v50  ;;  %809 = vmatpush3.bf16.msra.mxu1 %v872_v49 }
  0xaa   : > { %v309_v53 = vsel %vm308_vm7, %v302_v48, %v307_v52  ;;  %v253_v54 = vpop.permute.xlu1 %252  ;;  %v251_v55 = vpop.permute.xlu0 %250 }
  0xab   : > { %v255_v56 = vrot.slane %v253_v54, 4  ;;  %262 = vst.msk [vmem:[#allocation2 + $0x20] sm:$0xf] %vm226_vm0, %v253_v54  ;;  %v254_v57 = vrot.slane %v251_v55, 4  ;;  %v784_v58 = vcombine.high %v292_v46, %v309_v53  ;;  %v783_v59 = vcombine.low %v292_v46, %v309_v53 }
  0xad   : > { %v256_v60 = vsel %vm238_vm2, %v254_v57, %v255_v56  ;;  %520 = vmatprep.subr.bf16.mxu0 %v784_v58 }
  0xae   : > { %v258_v61 = vsel %vm257_vm8, %v251_v55, %v256_v60  ;;  %v270_v62 = vpop.permute.xlu1 %269  ;;  %v268_v63 = vpop.permute.xlu0 %267  ;;  %v873_v1 = vld [vmem:[#allocation2 + $0x38] ss:$12 sps:$4 sm:$0xff]   ;;  %521 = vmatpush1.bf16.msra.mxu0 %v783_v59 }
  0xaf   : > { %v272_v2 = vrot.slane %v270_v62, 4  ;;  %279 = vst.msk [vmem:[#allocation2 + $0x2c] sm:$0xf] %vm226_vm0, %v270_v62  ;;  %v271_v3 = vrot.slane %v268_v63, 4  ;;  %810 = vmatprep.subr.bf16.mxu1 %v873_v1 }
  0xb0   : > { %811 = vmatpush3.bf16.msra.mxu1 %v873_v1 }
  0xb1   : > { %v273_v4 = vsel %vm238_vm2, %v271_v3, %v272_v2 }
  0xb2   : > { %v275_v5 = vsel %vm274_vm9, %v268_v63, %v273_v4  ;;  %v235_v6 = vpop.permute.xlu1 %234  ;;  %v233_v7 = vpop.permute.xlu0 %232 }
  0xb3   : > { %v237_v8 = vrot.slane %v235_v6, 4  ;;  %245 = vst.msk [vmem:[#allocation2 + $0x14] sm:$0xf] %vm226_vm0, %v235_v6  ;;  %v236_v10 = vrot.slane %v233_v7, 4  ;;  %v781_v12 = vcombine.high %v258_v61, %v275_v5  ;;  %v780_v13 = vcombine.low %v258_v61, %v275_v5 }
  0xb5   : > { %v239_v14 = vsel %vm238_vm2, %v236_v10, %v237_v8  ;;  %522 = vmatprep.subr.bf16.mxu0 %v781_v12 }
  0xb6   : > { %v241_v15 = vsel %vm240_vm10, %v233_v7, %v239_v14  ;;  %v874_v16 = vld [vmem:[#allocation2 + $0x20] ss:$12 sps:$4 sm:$0xff]   ;;  %523 = vmatpush1.bf16.msra.mxu0 %v780_v13 }
  0xb7   : > { %v778_v17 = vcombine.high %v1017_v0, %v241_v15  ;;  %v777_v18 = vcombine.low %v1017_v0, %v241_v15  ;;  %812 = vmatprep.subr.bf16.mxu1 %v874_v16 }
  0xb8   : > { %813 = vmatpush3.bf16.msra.mxu1 %v874_v16 }
  0xb9   : > { %524 = vmatprep.subr.bf16.mxu0 %v778_v17 }
  0xba   : > { %v875_v19 = vld [vmem:[#allocation2 + $0x8] ss:$12 sps:$4 sm:$0xff]   ;;  %525 = vmatpush1.bf16.msra.mxu0 %v777_v18 }
  0xbb   : > { %814 = vmatprep.subr.bf16.mxu1 %v875_v19 }
  0xbc   : > { %815 = vmatpush3.bf16.msra.mxu1 %v875_v19 }
  0xbd   : > { %793 = vmatmul.mubr.msk.bf16.vlgmr.msra.gmra.mxu0 %vm493_vm1, %v1034_v9 }
  0xbe   : > { %552 = vmatprep.mubr.bf16.mxu0 %v942_v11 }
  0xbf   : > { %817 = vmatmul.mubr.msk.bf16.vlgmr.msra.gmra.mxu1 %vm493_vm1, %v877_v20  ;;  %v399_v21 = vpop.permute.xlu1 %398  ;;  %v394_v22 = vpop.permute.xlu0 %393 }
  0xc3   : > { %v404_v24 = vpop.permute.xlu1 %403  ;;  %v409_v33 = vpop.permute.xlu0 %408 }
  0xc5   : > { %794 = vmatmul.mubr.msk.bf16.gmra.mxu0 %vm493_vm1, %v877_v20 }
 0x17d   : > { %v544_v0 = vpop.f32.mrf.mxu0 }
 0x17e   : > { %v545_v23 = vadd.f32 %v544_v0, %v394_v22 }
 0x17f   : > { %v546_v25 = vpop.f32.mrf.mxu0  ;;  %v818_v11 = vpop.f32.mrf.mxu1 }
 0x180   : > { %vm612_vm11 = vcmp.ge.f32.partialorder %v545_v23, 0.0  ;;  %v624_v9 = vmul.f32 0.25, %v545_v23  ;;  %v547_v26 = vadd.f32 %v546_v25, %v394_v22  ;;  %v606_v28 = vadd.f32 %v818_v11, %v404_v24 }
 0x181   : > { %v548_v27 = vpop.f32.mrf.mxu0  ;;  %v597_v31 = vpop.f32.mrf.mxu1 }
 0x182   : > { %v636_v29 = vsel %vm612_vm11, %v545_v23, %v624_v9  ;;  %vm613_vm12 = vcmp.ge.f32.partialorder %v547_v26, 0.0  ;;  %v625_v30 = vmul.f32 0.25, %v547_v26  ;;  %v549_v32 = vadd.f32 %v548_v27, %v399_v21 }
 0x183   : > { %648 = vst [vmem:[%s1088_s26] sm:$0xff] %v636_v29  ;;  %v598_v34 = vadd.f32 %v597_v31, %v394_v22  ;;  %vm620_vm14 = vcmp.ge.f32.partialorder %v606_v28, 0.0  ;;  %v632_v35 = vmul.f32 0.25, %v606_v28  ;;  %v550_v36 = vpop.f32.mrf.mxu0  ;;  %v819_v39 = vpop.f32.mrf.mxu1 }
 0x184   : > { %v637_v37 = vsel %vm613_vm12, %v547_v26, %v625_v30  ;;  %vm615_vm15 = vcmp.ge.f32.partialorder %v549_v32, 0.0  ;;  %v627_v38 = vmul.f32 0.25, %v549_v32  ;;  %v551_v40 = vadd.f32 %v550_v36, %v399_v21 }
 0x185   : > { %649 = vst [vmem:[%s1088_s26 + $0x8] sm:$0xff] %v637_v37  ;;  %vm614_vm0 = vcmp.ge.f32.partialorder %v598_v34, 0.0  ;;  %v626_v41 = vmul.f32 0.25, %v598_v34  ;;  %v644_v42 = vsel %vm620_vm14, %v606_v28, %v632_v35  ;;  %v609_v43 = vadd.f32 %v819_v39, %v409_v33  ;;  %v554_v44 = vpop.f32.mrf.mxu0  ;;  %v600_v47 = vpop.f32.mrf.mxu1 }
 0x186   : > { %v639_v45 = vsel %vm615_vm15, %v549_v32, %v627_v38  ;;  %657 = vst.msk [vmem:[%s1088_s26 + $0x40] sm:$0xff] %vm650_vm13, %v644_v42  ;;  %vm616_vm1 = vcmp.ge.f32.partialorder %v551_v40, 0.0  ;;  %v628_v46 = vmul.f32 0.25, %v551_v40  ;;  %v555_v48 = vadd.f32 %v554_v44, %v404_v24 }
 0x187   : > { %v638_v49 = vsel %vm614_vm0, %v598_v34, %v626_v41  ;;  %652 = vst [vmem:[%s1088_s26 + $0x18] sm:$0xff] %v639_v45  ;;  %vm623_vm2 = vcmp.ge.f32.partialorder %v609_v43, 0.0  ;;  %v635_v50 = vmul.f32 0.25, %v609_v43  ;;  %v601_v51 = vadd.f32 %v600_v47, %v399_v21  ;;  %v556_v52 = vpop.f32.mrf.mxu0 }
 0x188   : > { %651 = vst.msk [vmem:[%s1088_s26 + $0x10] sm:$0xff] %vm650_vm13, %v638_v49  ;;  %v640_v53 = vsel %vm616_vm1, %v551_v40, %v628_v46  ;;  %vm618_vm3 = vcmp.ge.f32.partialorder %v555_v48, 0.0  ;;  %v630_v54 = vmul.f32 0.25, %v555_v48  ;;  %v557_v55 = vadd.f32 %v556_v52, %v404_v24 }
 0x189   : > { %v647_v56 = vsel %vm623_vm2, %v609_v43, %v635_v50  ;;  %653 = vst [vmem:[%s1088_s26 + $0x20] sm:$0xff] %v640_v53  ;;  %vm617_vm4 = vcmp.ge.f32.partialorder %v601_v51, 0.0  ;;  %v629_v57 = vmul.f32 0.25, %v601_v51  ;;  %v558_v58 = vpop.f32.mrf.mxu0 }
 0x18a   : > { %660 = vst.msk [vmem:[%s1088_s26 + $0x58] sm:$0xff] %vm650_vm13, %v647_v56  ;;  %v642_v59 = vsel %vm618_vm3, %v555_v48, %v630_v54  ;;  %vm619_vm5 = vcmp.ge.f32.partialorder %v557_v55, 0.0  ;;  %v631_v60 = vmul.f32 0.25, %v557_v55  ;;  %v559_v61 = vadd.f32 %v558_v58, %v409_v33 }
 0x18b   : > { %v641_v62 = vsel %vm617_vm4, %v601_v51, %v629_v57  ;;  %655 = vst [vmem:[%s1088_s26 + $0x30] sm:$0xff] %v642_v59  ;;  %v560_v63 = vpop.f32.mrf.mxu0 }
 0x18c   : > { %654 = vst.msk [vmem:[%s1088_s26 + $0x28] sm:$0xff] %vm650_vm13, %v641_v62  ;;  %v643_v1 = vsel %vm619_vm5, %v557_v55, %v631_v60  ;;  %vm621_vm6 = vcmp.ge.f32.partialorder %v559_v61, 0.0  ;;  %v633_v2 = vmul.f32 0.25, %v559_v61  ;;  %v561_v3 = vadd.f32 %v560_v63, %v409_v33 }
 0x18d   : > { %656 = vst [vmem:[%s1088_s26 + $0x38] sm:$0xff] %v643_v1 }
 0x18e   : > { %v645_v4 = vsel %vm621_vm6, %v559_v61, %v633_v2  ;;  %vm622_vm7 = vcmp.ge.f32.partialorder %v561_v3, 0.0  ;;  %v634_v5 = vmul.f32 0.25, %v561_v3 }
 0x18f   : > { %658 = vst [vmem:[%s1088_s26 + $0x48] sm:$0xff] %v645_v4 }
 0x190   : > { %v646_v6 = vsel %vm622_vm7, %v561_v3, %v634_v5 }
 0x191   : > { %659 = vst [vmem:[%s1088_s26 + $0x50] sm:$0xff] %v646_v6 }
 0x192 PF: > { %s14_s14 = sadd.s32 1, %s930_s14   ;;  %s1121_s12 = smov %s926_s13 }
 0x193   : > { %p11_p2 = scmp.ge.s32.totalorder %s14_s14, 4   ;;  %s1122_s13 = smov %s1124_s16 }
 0x195   :  { %13 = sbr.rel (!%p11_p2) target bundleno = 2 (0x2), region = 67 }
 0x19a   :  { %690 = vsyncpa [#allocation4], 1 }
 0x19b   :  { %692 = vsyncpa [#allocation4 + $0x1], 1 }

// kernel: _lambda_.4
= control target key start
LH: loop header
LB: loop body
LE: loop exit
PB: predicated region body
PF: predicated region fallthrough
CT: control target
= control target key end

     0   :  { %s1587_s12 = smov 0   ;;  %s1589_s13 = smov 0   ;;  %s2101_s0 = inlined_call_operand.vmem [shape: bf16[2,1,8,1158], index: 0, kind: input, shape index: {}]   ;;  %s2102_s1 = inlined_call_operand.vmem [shape: bf16[32,72], index: 1, kind: input, shape index: {}]   ;;  %s2103_s2 = inlined_call_operand.vmem [shape: f32[32,1], index: 2, kind: input, shape index: {}]   ;;  %s2104_s3 = inlined_call_operand.vmem [shape: f32[2,1,32,1088], index: 3, kind: output, shape index: {}]  }
   0x1   :  { %s1591_s14 = smov 0  }
   0x2 LB: > { %s25_s15 = sadd.s32 1, %s1552_s13  ;;  %p1402_p0 = scmp.ge.s32.totalorder %s1556_s14, 1  ;;  %s1556_s14 = sphi %s1591_s14, %s13_s14   ;;  %s1552_s13 = sphi %s1589_s13, %s2106_s13   ;;  %s1548_s12 = sphi %s1587_s12, %s2105_s12  }
   0x3   : > { %p27_p1 = scmp.ge.s32.totalorder %s25_s15, 2  ;;  %p157_p2 = scmp.lt.s32.totalorder %s1556_s14, 3 }
   0x5   : > { %s2108_s15 = smov (%p27_p1, %s25_s15), 0  ;;  %p158_p3 = pnand %p1402_p0, %p157_p2 }
   0x6   : > { %p189_p4 = scmp.lt.s32.totalorder (!%p158_p3), %s1548_s12, 1  ;;  %s1558_s20 = smov (!%p158_p3), 58  }
   0x7   : > { %161 = sbr.rel (%p158_p3) target bundleno = 435 (0x1b3), region = 32  ;;  %s1559_s21 = smov (!%p158_p3), 60  }
   0x8   : > { %s1560_s22 = smov (!%p158_p3), 59   ;;  %s1561_s23 = smov (!%p158_p3), 93  }
   0x9   : > { %s1562_s24 = smov (!%p158_p3), 92   ;;  %s1563_s25 = smov (!%p158_p3), 126  }
   0xa   : > { %s1564_s26 = smov (!%p158_p3), 94   ;;  %s1565_s27 = smov (!%p158_p3), 127  }
   0xc   : > { %s2110_s12 = smov (!%p189_p4, %s1548_s12), 1  ;;  %v1566_v4 = vmov 0   ;;  %vm217_vm0 = vcmask 519168   ;;  %v624_v12 = vld [vmem:[%s2103_s2] sm:$0xff]  ;;  %v625_v13 = vld [vmem:[%s2103_s2 + $0x8] sm:$0xff]  ;;  %v627_v14 = vld [vmem:[%s2103_s2 + $0x18] sm:$0xff] }
   0xd   : > { %s1490_s16 = smul.u32 40, %s2110_s12  ;;  %932 = vmatprep.mubr.bf16.mxu0 %v1566_v4  ;;  %985 = vmatprep.mubr.bf16.mxu1 %v1566_v4  ;;  %v626_v15 = vld [vmem:[%s2103_s2 + $0x10] sm:$0xff]  ;;  %vm244_vm1 = vcmask 1043456   ;;  %vm556_vm2 = vcmask 474112   ;;  %vm466_vm3 = vcmask 490496   ;;  %vm511_vm4 = vcmask 482304  }
   0xe   : > { %1526 = vset.pattern.permute.xlu1 %v1566_v4  ;;  %1525 = vset.pattern.permute.xlu0 %v1566_v4  ;;  %vm378_vm5 = vcmask 760832   ;;  %vm422_vm6 = vcmask 752640   ;;  %vm290_vm7 = vcmask 1031168   ;;  %vm334_vm8 = vcmask 769024   ;;  %s1491_s17 = smul.u32 288, %s2110_s12 }
   0xf   : > { %s1611_s19 = scalar_lea.vmem %s2101_s0, %s1490_s16  ;;  %vm246_vm9 = vcmask 1039360   ;;  %vm865_vm10 = vcmask 588800  }
  0x10   : > { %v1614_v0 = vld [vmem:[%s1611_s19] sm:$0xff]  ;;  %v1617_v1 = vld [vmem:[%s1611_s19 + $0x8] sm:$0xff]  ;;  %v1620_v2 = vld [vmem:[%s1611_s19 + $0x10] sm:$0xff] }
  0x11   : > { %540 = vrot.lane.b32.xlu0 %v1614_v0, %s1558_s20  ;;  %450 = vrot.lane.b32.xlu1 %v1614_v0, %s1559_s21  ;;  %v1627_v3 = vld [vmem:[%s1611_s19 + $0x18] sm:$0xff]  ;;  %v534_v5 = vld [vmem:[%s1611_s19 + $0x20] sm:$0xff] }
  0x12   : > { %v356_v6 = vld [vmem:[%s1611_s19 + $0x20] sm:$0xf] }
  0x13   : > { %v212_v7 = vld [vmem:[%s1611_s19 + $0x20] sm:$0xf] }
  0x14   : > { %218 = vst.msk [vmem:[#allocation2 + $0x20] sm:$0xf] %vm217_vm0, %v212_v7  ;;  %v400_v8 = vld [vmem:[%s1611_s19 + $0x20] sm:$0xf] }
  0x15   : > { %542 = vrot.lane.b32.xlu0 %v1617_v1, %s1558_s20  ;;  %452 = vrot.lane.b32.xlu1 %v1617_v1, %s1559_s21  ;;  %v268_v9 = vld [vmem:[%s1611_s19 + $0x20] sm:$0xf] }
  0x16   : > { %v312_v10 = vld [vmem:[%s1611_s19 + $0x20] sm:$0xf] }
  0x17   : > { %v223_v11 = vld [vmem:[%s1611_s19 + $0x20] sm:$0xf] }
  0x19   : > { %495 = vrot.lane.b32.xlu0 %v1614_v0, %s1560_s22  ;;  %497 = vrot.lane.b32.xlu1 %v1617_v1, %s1560_s22 }
  0x1d   : > { %364 = vrot.lane.b32.xlu1 %v1617_v1, %s1561_s23  ;;  %362 = vrot.lane.b32.xlu0 %v1614_v0, %s1561_s23 }
  0x21   : > { %408 = vrot.lane.b32.xlu1 %v1617_v1, %s1562_s24  ;;  %406 = vrot.lane.b32.xlu0 %v1614_v0, %s1562_s24 }
  0x25   : > { %276 = vrot.lane.b32.xlu1 %v1617_v1, %s1563_s25  ;;  %274 = vrot.lane.b32.xlu0 %v1614_v0, %s1563_s25 }
  0x29   : > { %320 = vrot.lane.b32.xlu1 %v1617_v1, %s1564_s26  ;;  %318 = vrot.lane.b32.xlu0 %v1614_v0, %s1564_s26 }
  0x2d   : > { %544 = vrot.lane.b32.xlu0 %v1620_v2, %s1558_s20  ;;  %229 = vrot.lane.b32.xlu1 %v1614_v0, %s1565_s27 }
  0x31   : > { %231 = vrot.lane.b32.xlu0 %v1617_v1, %s1565_s27  ;;  %454 = vrot.lane.b32.xlu1 %v1620_v2, %s1559_s21 }
  0x35   : > { %499 = vrot.lane.b32.xlu0 %v1620_v2, %s1560_s22  ;;  %366 = vrot.lane.b32.xlu1 %v1620_v2, %s1561_s23 }
  0x39   : > { %410 = vrot.lane.b32.xlu0 %v1620_v2, %s1562_s24  ;;  %546 = vrot.lane.b32.xlu1 %v1627_v3, %s1558_s20 }
  0x3d   : > { %278 = vrot.lane.b32.xlu0 %v1620_v2, %s1563_s25  ;;  %322 = vrot.lane.b32.xlu1 %v1620_v2, %s1564_s26 }
  0x41   : > { %456 = vrot.lane.b32.xlu0 %v1627_v3, %s1559_s21  ;;  %501 = vrot.lane.b32.xlu1 %v1627_v3, %s1560_s22 }
  0x45   : > { %233 = vrot.lane.b32.xlu0 %v1620_v2, %s1565_s27  ;;  %368 = vrot.lane.b32.xlu1 %v1627_v3, %s1561_s23 }
  0x49   : > { %412 = vrot.lane.b32.xlu0 %v1627_v3, %s1562_s24  ;;  %280 = vrot.lane.b32.xlu1 %v1627_v3, %s1563_s25 }
  0x4d   : > { %324 = vrot.lane.b32.xlu0 %v1627_v3, %s1564_s26  ;;  %548 = vrot.lane.b32.xlu1 %v534_v5, %s1558_s20  ;;  %s2011_s20 = scalar_lea.vmem %s2104_s3, %s1491_s17 }
  0x51   : > { %235 = vrot.lane.b32.xlu0 %v1627_v3, %s1565_s27  ;;  %458 = vrot.lane.b32.xlu1 %v534_v5, %s1559_s21 }
  0x55   : > { %503 = vrot.lane.b32.xlu0 %v534_v5, %s1560_s22  ;;  %370 = vrot.lane.b32.xlu1 %v356_v6, %s1561_s23 }
  0x59   : > { %414 = vrot.lane.b32.xlu0 %v400_v8, %s1562_s24  ;;  %282 = vrot.lane.b32.xlu1 %v268_v9, %s1563_s25 }
  0x5d   : > { %326 = vrot.lane.b32.xlu0 %v312_v10, %s1564_s26  ;;  %237 = vrot.lane.b32.xlu1 %v223_v11, %s1565_s27 }
  0x61   : > { %630 = vperm.xlu0 %1525, %v624_v12   ;;  %635 = vperm.xlu1 %1526, %v625_v13  }
  0x65   : > { %645 = vperm.xlu0 %1525, %v627_v14   ;;  %640 = vperm.xlu1 %1526, %v626_v15  }
  0x83   : > { %v541_v16 = vpop.permute.xlu0 %540  ;;  %v451_v17 = vpop.permute.xlu1 %450 }
  0x84   : > { %v460_v18 = vrot.slane %v451_v17, 4  ;;  %v550_v21 = vrot.slane %v541_v16, 4 }
  0x87   : > { %v1721_v19 = vpop.permute.xlu0 %542  ;;  %v1723_v20 = vpop.permute.xlu1 %452 }
  0x88   : > { %v551_v22 = vrot.slane %v1721_v19, 4  ;;  %v461_v23 = vrot.slane %v1723_v20, 4 }
  0x8a   : > { %v555_v24 = vsel %vm244_vm1, %v550_v21, %v551_v22  ;;  %v465_v25 = vsel %vm244_vm1, %v460_v18, %v461_v23 }
  0x8b   : > { %v557_v26 = vsel %vm556_vm2, %v541_v16, %v555_v24  ;;  %v467_v27 = vsel %vm466_vm3, %v451_v17, %v465_v25  ;;  %v496_v28 = vpop.permute.xlu0 %495  ;;  %v1733_v29 = vpop.permute.xlu1 %497 }
  0x8c   : > { %v505_v30 = vrot.slane %v496_v28, 4  ;;  %v506_v31 = vrot.slane %v1733_v29, 4  ;;  %v1444_v32 = vcombine.high %v557_v26, %v557_v26  ;;  %v1443_v33 = vcombine.low %v557_v26, %v557_v26 }
  0x8e   : > { %v510_v34 = vsel %vm244_vm1, %v505_v30, %v506_v31  ;;  %1452 = vmatprep.subr.msk.bf16.mxu0 %vm244_vm1, %v1444_v32  ;;  %v874_v35 = vsel %vm244_vm1, %v1443_v33, 0 }
  0x8f   : > { %v512_v36 = vsel %vm511_vm4, %v496_v28, %v510_v34  ;;  %v1742_v37 = vpop.permute.xlu1 %364  ;;  %v363_v38 = vpop.permute.xlu0 %362  ;;  %907 = vmatpush1.bf16.msra.mxu0 %v874_v35  ;;  %v1808_v35 = vld [vmem:[%s2102_s1] sm:$0xff]  }
  0x90   : > { %v373_v39 = vrot.slane %v1742_v37, 4  ;;  %v372_v40 = vrot.slane %v363_v38, 4  ;;  %v1435_v41 = vcombine.high %v467_v27, %v512_v36  ;;  %v1434_v42 = vcombine.low %v467_v27, %v512_v36 }
  0x92   : > { %v377_v43 = vsel %vm244_vm1, %v372_v40, %v373_v39  ;;  %908 = vmatprep.subr.bf16.mxu0 %v1435_v41 }
  0x93   : > { %v379_v44 = vsel %vm378_vm5, %v363_v38, %v377_v43  ;;  %v1749_v45 = vpop.permute.xlu1 %408  ;;  %v407_v46 = vpop.permute.xlu0 %406  ;;  %909 = vmatpush1.bf16.msra.mxu0 %v1434_v42 }
  0x94   : > { %v417_v47 = vrot.slane %v1749_v45, 4  ;;  %v416_v48 = vrot.slane %v407_v46, 4 }
  0x96   : > { %v421_v49 = vsel %vm244_vm1, %v416_v48, %v417_v47 }
  0x97   : > { %v423_v50 = vsel %vm422_vm6, %v407_v46, %v421_v49  ;;  %v1756_v51 = vpop.permute.xlu1 %276  ;;  %v275_v52 = vpop.permute.xlu0 %274 }
  0x98   : > { %v285_v53 = vrot.slane %v1756_v51, 4  ;;  %v284_v54 = vrot.slane %v275_v52, 4  ;;  %v1426_v55 = vcombine.high %v379_v44, %v423_v50  ;;  %v1425_v56 = vcombine.low %v379_v44, %v423_v50 }
  0x9a   : > { %v289_v57 = vsel %vm244_vm1, %v284_v54, %v285_v53  ;;  %910 = vmatprep.subr.bf16.mxu0 %v1426_v55 }
  0x9b   : > { %v291_v58 = vsel %vm290_vm7, %v275_v52, %v289_v57  ;;  %v1763_v59 = vpop.permute.xlu1 %320  ;;  %v319_v60 = vpop.permute.xlu0 %318  ;;  %911 = vmatpush1.bf16.msra.mxu0 %v1425_v56  ;;  %v1847_v57 = vld [vmem:[%s2102_s1 + $0x8] sm:$0xff]  }
  0x9c   : > { %v329_v61 = vrot.slane %v1763_v59, 4  ;;  %v328_v62 = vrot.slane %v319_v60, 4 }
  0x9e   : > { %v333_v63 = vsel %vm244_vm1, %v328_v62, %v329_v61 }
  0x9f   : > { %v335_v5 = vsel %vm334_vm8, %v319_v60, %v333_v63  ;;  %v545_v6 = vpop.permute.xlu0 %544  ;;  %v230_v7 = vpop.permute.xlu1 %229 }
  0xa0   : > { %v552_v8 = vrot.slane %v545_v6, 4  ;;  %v1417_v9 = vcombine.high %v291_v58, %v335_v5  ;;  %v1416_v10 = vcombine.low %v291_v58, %v335_v5  ;;  %v239_v12 = vrot.slane %v230_v7, 4 }
  0xa2   : > { %v558_v11 = vsel %vm244_vm1, %v551_v22, %v552_v8  ;;  %912 = vmatprep.subr.bf16.mxu0 %v1417_v9 }
  0xa3   : > { %v559_v13 = vsel %vm556_vm2, %v1721_v19, %v558_v11  ;;  %v1773_v14 = vpop.permute.xlu0 %231  ;;  %v1775_v15 = vpop.permute.xlu1 %454  ;;  %913 = vmatpush1.bf16.msra.mxu0 %v1416_v10 }
  0xa4   : > { %v240_v16 = vrot.slane %v1773_v14, 4  ;;  %v462_v17 = vrot.slane %v1775_v15, 4  ;;  %v1446_v18 = vcombine.high %v559_v13, %v559_v13  ;;  %v1445_v21 = vcombine.low %v559_v13, %v559_v13 }
  0xa6   : > { %v245_v22 = vsel %vm244_vm1, %v239_v12, %v240_v16  ;;  %v468_v19 = vsel %vm244_vm1, %v461_v23, %v462_v17  ;;  %1455 = vmatprep.subr.msk.bf16.mxu1 %vm244_vm1, %v1446_v18  ;;  %v880_v24 = vsel %vm244_vm1, %v1445_v21, 0 }
  0xa7   : > { %v247_v25 = vsel %vm246_vm9, %v230_v7, %v245_v22  ;;  %v469_v26 = vsel %vm466_vm3, %v1723_v20, %v468_v19  ;;  %v500_v27 = vpop.permute.xlu0 %499  ;;  %v1792_v28 = vpop.permute.xlu1 %366  ;;  %960 = vmatpush1.bf16.msra.mxu1 %v880_v24 }
  0xa8   : > { %v507_v30 = vrot.slane %v500_v27, 4  ;;  %v374_v32 = vrot.slane %v1792_v28, 4  ;;  %v1408_v33 = vcombine.high %v1614_v0, %v247_v25  ;;  %v1407_v23 = vcombine.low %v1614_v0, %v247_v25 }
  0xaa   : > { %v513_v34 = vsel %vm244_vm1, %v506_v31, %v507_v30  ;;  %v380_v20 = vsel %vm244_vm1, %v373_v39, %v374_v32  ;;  %914 = vmatprep.subr.bf16.mxu0 %v1408_v33 }
  0xab   : > { %v514_v36 = vsel %vm511_vm4, %v1733_v29, %v513_v34  ;;  %v381_v0 = vsel %vm378_vm5, %v1742_v37, %v380_v20  ;;  %v1814_v38 = vpop.permute.xlu0 %410  ;;  %v1816_v31 = vpop.permute.xlu1 %546  ;;  %915 = vmatpush1.bf16.msra.mxu0 %v1407_v23 }
  0xac   : > { %v418_v39 = vrot.slane %v1814_v38, 4  ;;  %v553_v40 = vrot.slane %v1816_v31, 4  ;;  %v1437_v41 = vcombine.high %v469_v26, %v514_v36  ;;  %v1436_v42 = vcombine.low %v469_v26, %v514_v36 }
  0xae   : > { %v424_v29 = vsel %vm244_vm1, %v417_v47, %v418_v39  ;;  %v560_v37 = vsel %vm244_vm1, %v552_v8, %v553_v40  ;;  %961 = vmatprep.subr.bf16.mxu1 %v1437_v41  ;;  %1453 = vmatmul.mubr.msk.bf16.vlgmr.msra.gmra.mxu0 %vm865_vm10, %v1808_v35 }
  0xaf   : > { %v425_v43 = vsel %vm422_vm6, %v1749_v45, %v424_v29  ;;  %v561_v44 = vsel %vm556_vm2, %v545_v6, %v560_v37  ;;  %v279_v46 = vpop.permute.xlu0 %278  ;;  %v1833_v48 = vpop.permute.xlu1 %322  ;;  %962 = vmatpush1.bf16.msra.mxu1 %v1436_v42  ;;  %942 = vmatprep.mubr.bf16.mxu0 %v1566_v4 }
  0xb0   : > { %v286_v47 = vrot.slane %v279_v46, 4  ;;  %v330_v49 = vrot.slane %v1833_v48, 4  ;;  %v1428_v50 = vcombine.high %v381_v0, %v425_v43  ;;  %v1448_v52 = vcombine.high %v561_v44, %v561_v44 }
  0xb1   : > { %v1427_v54 = vcombine.low %v381_v0, %v425_v43  ;;  %v1447_v55 = vcombine.low %v561_v44, %v561_v44 }
  0xb2   : > { %v292_v56 = vsel %vm244_vm1, %v285_v53, %v286_v47  ;;  %v336_v45 = vsel %vm244_vm1, %v329_v61, %v330_v49  ;;  %963 = vmatprep.subr.bf16.mxu1 %v1428_v50  ;;  %1458 = vmatprep.subr.msk.bf16.mxu0 %vm244_vm1, %v1448_v52 }
  0xb3   : > { %v293_v58 = vsel %vm290_vm7, %v1756_v51, %v292_v56  ;;  %v337_v60 = vsel %vm334_vm8, %v1763_v59, %v336_v45  ;;  %v1853_v62 = vpop.permute.xlu0 %456  ;;  %v1855_v53 = vpop.permute.xlu1 %501  ;;  %964 = vmatpush1.bf16.msra.mxu1 %v1427_v54  ;;  %v886_v61 = vsel %vm244_vm1, %v1447_v55, 0 }
  0xb4   : > { %v463_v63 = vrot.slane %v1853_v62, 4  ;;  %v508_v5 = vrot.slane %v1855_v53, 4  ;;  %1013 = vmatpush1.bf16.msra.mxu0 %v886_v61  ;;  %v1419_v6 = vcombine.high %v293_v58, %v337_v60  ;;  %v1418_v7 = vcombine.low %v293_v58, %v337_v60 }
  0xb6   : > { %v470_v51 = vsel %vm244_vm1, %v462_v17, %v463_v63  ;;  %v515_v59 = vsel %vm244_vm1, %v507_v30, %v508_v5  ;;  %965 = vmatprep.subr.bf16.mxu1 %v1419_v6  ;;  %1454 = vmatmul.mubr.msk.bf16.gmra.mxu0 %vm865_vm10, %v1847_v57 }
  0xb7   : > { %v471_v8 = vsel %vm466_vm3, %v1775_v15, %v470_v51  ;;  %v516_v9 = vsel %vm511_vm4, %v500_v27, %v515_v59  ;;  %v234_v10 = vpop.permute.xlu0 %233  ;;  %v1873_v11 = vpop.permute.xlu1 %368  ;;  %966 = vmatpush1.bf16.msra.mxu1 %v1418_v7  ;;  %1038 = vmatprep.mubr.bf16.mxu0 %v1566_v4 }
  0xb8   : > { %v241_v12 = vrot.slane %v234_v10, 4  ;;  %v375_v13 = vrot.slane %v1873_v11, 4  ;;  %v1438_v17 = vcombine.low %v471_v8, %v516_v9  ;;  %v1439_v18 = vcombine.high %v471_v8, %v516_v9 }
  0xba   : > { %v248_v21 = vsel %vm244_vm1, %v240_v16, %v241_v12  ;;  %v382_v15 = vsel %vm244_vm1, %v374_v32, %v375_v13  ;;  %1014 = vmatprep.subr.bf16.mxu0 %v1439_v18 }
  0xbb   : > { %v249_v22 = vsel %vm246_vm9, %v1773_v14, %v248_v21  ;;  %v383_v19 = vsel %vm378_vm5, %v1792_v28, %v382_v15  ;;  %v1889_v24 = vpop.permute.xlu0 %412  ;;  %v1891_v25 = vpop.permute.xlu1 %280  ;;  %1015 = vmatpush1.bf16.msra.mxu0 %v1438_v17 }
  0xbc   : > { %v419_v16 = vrot.slane %v1889_v24, 4  ;;  %v287_v26 = vrot.slane %v1891_v25, 4  ;;  %v1410_v27 = vcombine.high %v1617_v1, %v249_v22  ;;  %v1409_v30 = vcombine.low %v1617_v1, %v249_v22 }
  0xbe   : > { %v426_v14 = vsel %vm244_vm1, %v418_v39, %v419_v16  ;;  %v294_v28 = vsel %vm244_vm1, %v286_v47, %v287_v26  ;;  %967 = vmatprep.subr.bf16.mxu1 %v1410_v27 }
  0xbf   : > { %v427_v32 = vsel %vm422_vm6, %v1814_v38, %v426_v14  ;;  %v295_v33 = vsel %vm290_vm7, %v279_v46, %v294_v28  ;;  %v1908_v23 = vpop.permute.xlu0 %324  ;;  %v549_v34 = vpop.permute.xlu1 %548  ;;  %968 = vmatpush1.bf16.msra.mxu1 %v1409_v30 }
  0xc0   : > { %v331_v1 = vrot.slane %v1908_v23, 4  ;;  %v554_v20 = vrot.slane %v549_v34, 4  ;;  %v1429_v36 = vcombine.low %v383_v19, %v427_v32  ;;  %v1430_v0 = vcombine.high %v383_v19, %v427_v32 }
  0xc2   : > { %v338_v39 = vsel %vm244_vm1, %v330_v49, %v331_v1  ;;  %v562_v41 = vsel %vm244_vm1, %v553_v40, %v554_v20  ;;  %v564_v38 = vsel %vm556_vm2, %v549_v34, %v554_v20  ;;  %1016 = vmatprep.subr.bf16.mxu0 %v1430_v0  ;;  %1456 = vmatmul.mubr.msk.bf16.vlgmr.msra.gmra.mxu1 %vm865_vm10, %v1808_v35 }
  0xc3   : > { %v339_v42 = vsel %vm334_vm8, %v1833_v48, %v338_v39  ;;  %v563_v29 = vsel %vm556_vm2, %v1816_v31, %v562_v41  ;;  %574 = vst.msk [vmem:[#allocation2 + $0x140] sm:$0xf] %vm217_vm0, %v564_v38  ;;  %v1925_v37 = vpop.permute.xlu0 %235  ;;  %v459_v43 = vpop.permute.xlu1 %458  ;;  %1017 = vmatpush1.bf16.msra.mxu0 %v1429_v36  ;;  %995 = vmatprep.mubr.bf16.mxu1 %v1566_v4 }
  0xc4   : > { %v242_v40 = vrot.slane %v1925_v37, 4  ;;  %v464_v44 = vrot.slane %v459_v43, 4  ;;  %v1420_v46 = vcombine.low %v295_v33, %v339_v42  ;;  %v1421_v47 = vcombine.high %v295_v33, %v339_v42 }
  0xc5   : > { %v1450_v49 = vcombine.high %v563_v29, %v563_v29  ;;  %v1449_v50 = vcombine.low %v563_v29, %v563_v29 }
  0xc6   : > { %v250_v48 = vsel %vm244_vm1, %v241_v12, %v242_v40  ;;  %v472_v31 = vsel %vm244_vm1, %v463_v63, %v464_v44  ;;  %v474_v52 = vsel %vm466_vm3, %v459_v43, %v464_v44  ;;  %1018 = vmatprep.subr.bf16.mxu0 %v1421_v47 }
  0xc7   : > { %v251_v54 = vsel %vm246_vm9, %v234_v10, %v250_v48  ;;  %v473_v55 = vsel %vm466_vm3, %v1853_v62, %v472_v31  ;;  %484 = vst.msk [vmem:[#allocation2 + $0xf8] sm:$0xf] %vm217_vm0, %v474_v52  ;;  %v504_v56 = vpop.permute.xlu0 %503  ;;  %v371_v45 = vpop.permute.xlu1 %370  ;;  %1461 = vmatprep.subr.msk.bf16.mxu1 %vm244_vm1, %v1450_v49  ;;  %1019 = vmatpush1.bf16.msra.mxu0 %v1420_v46  ;;  %v892_v58 = vsel %vm244_vm1, %v1449_v50, 0 }
  0xc8   : > { %v509_v60 = vrot.slane %v504_v56, 4  ;;  %v376_v61 = vrot.slane %v371_v45, 4  ;;  %395 = vst.msk [vmem:[#allocation2 + $0xb0] sm:$0xf] %vm217_vm0, %v371_v45  ;;  %1066 = vmatpush1.bf16.msra.mxu1 %v892_v58  ;;  %v1411_v63 = vcombine.low %v1620_v2, %v251_v54  ;;  %v1412_v6 = vcombine.high %v1620_v2, %v251_v54 }
  0xca   : > { %v517_v62 = vsel %vm244_vm1, %v508_v5, %v509_v60  ;;  %v519_v7 = vsel %vm511_vm4, %v504_v56, %v509_v60  ;;  %v384_v51 = vsel %vm244_vm1, %v375_v13, %v376_v61  ;;  %1020 = vmatprep.subr.bf16.mxu0 %v1412_v6  ;;  %v1529_v59 = vld [vmem:[#allocation2 + $0x140] ss:$0 sps:$4 sm:$0xff]   ;;  %1457 = vmatmul.mubr.msk.bf16.gmra.mxu1 %vm865_vm10, %v1847_v57 }
  0xcb   : > { %v518_v8 = vsel %vm511_vm4, %v1855_v53, %v517_v62  ;;  %529 = vst.msk [vmem:[#allocation2 + $0x11c] sm:$0xf] %vm217_vm0, %v519_v7  ;;  %v385_v2 = vsel %vm378_vm5, %v1873_v11, %v384_v51  ;;  %v415_v5 = vpop.permute.xlu0 %414  ;;  %v283_v9 = vpop.permute.xlu1 %282  ;;  %1021 = vmatpush1.bf16.msra.mxu0 %v1411_v63  ;;  %1091 = vmatprep.mubr.bf16.mxu1 %v1566_v4  ;;  %v898_v17 = vsel %vm244_vm1, %v1529_v59, 0 }
  0xcc   : > { %v420_v10 = vrot.slane %v415_v5, 4  ;;  %439 = vst.msk [vmem:[#allocation2 + $0xd4] sm:$0xf] %vm217_vm0, %v415_v5  ;;  %v288_v12 = vrot.slane %v283_v9, 4  ;;  %307 = vst.msk [vmem:[#allocation2 + $0x68] sm:$0xf] %vm217_vm0, %v283_v9  ;;  %1489 = vmatprep.subr.msk.bf16.mxu0 %vm244_vm1, %v1529_v59  ;;  %v1440_v13 = vcombine.low %v473_v55, %v518_v8  ;;  %v1441_v53 = vcombine.high %v473_v55, %v518_v8 }
  0xce   : > { %v428_v11 = vsel %vm244_vm1, %v419_v16, %v420_v10  ;;  %v296_v18 = vsel %vm244_vm1, %v287_v26, %v288_v12  ;;  %1459 = vmatmul.mubr.msk.bf16.vlgmr.msra.gmra.mxu0 %vm865_vm10, %v1808_v35  ;;  %1067 = vmatprep.subr.bf16.mxu1 %v1441_v53 }
  0xcf   : > { %v429_v21 = vsel %vm422_vm6, %v1889_v24, %v428_v11  ;;  %v297_v15 = vsel %vm290_vm7, %v1891_v25, %v296_v18  ;;  %v327_v22 = vpop.permute.xlu0 %326  ;;  %v238_v19 = vpop.permute.xlu1 %237  ;;  %1068 = vmatpush1.bf16.msra.mxu1 %v1440_v13  ;;  %1476 = vmatpush3.bf16.msra.mxu0 %v898_v17 }
  0xd0   : > { %v332_v27 = vrot.slane %v327_v22, 4  ;;  %351 = vst.msk [vmem:[#allocation2 + $0x8c] sm:$0xf] %vm217_vm0, %v327_v22  ;;  %v243_v16 = vrot.slane %v238_v19, 4  ;;  %263 = vst.msk [vmem:[#allocation2 + $0x44] sm:$0xf] %vm217_vm0, %v238_v19  ;;  %v1431_v26 = vcombine.low %v385_v2, %v429_v21  ;;  %v1432_v30 = vcombine.high %v385_v2, %v429_v21  ;;  %1048 = vmatprep.mubr.bf16.mxu0 %v1566_v4 }
  0xd2   : > { %v340_v24 = vsel %vm244_vm1, %v331_v1, %v332_v27  ;;  %v252_v25 = vsel %vm244_vm1, %v242_v40, %v243_v16  ;;  %v1530_v14 = vld [vmem:[#allocation2 + $0xf8] ss:$36 sps:$4 sm:$0xff]   ;;  %1069 = vmatprep.subr.bf16.mxu1 %v1432_v30 }
  0xd3   : > { %v341_v28 = vsel %vm334_vm8, %v1908_v23, %v340_v24  ;;  %v253_v32 = vsel %vm246_vm9, %v1925_v37, %v252_v25  ;;  %1070 = vmatpush1.bf16.msra.mxu1 %v1431_v26  ;;  %v1531_v33 = vld [vmem:[#allocation2 + $0xb0] ss:$36 sps:$4 sm:$0xff]   ;;  %1477 = vmatprep.subr.bf16.mxu0 %v1530_v14 }
  0xd4   : > { %v1422_v34 = vcombine.low %v297_v15, %v341_v28  ;;  %v1423_v20 = vcombine.high %v297_v15, %v341_v28  ;;  %1478 = vmatpush3.bf16.msra.mxu0 %v1530_v14  ;;  %v1414_v1 = vcombine.high %v1627_v3, %v253_v32  ;;  %v1413_v23 = vcombine.low %v1627_v3, %v253_v32 }
  0xd5   : > { %1479 = vmatprep.subr.bf16.mxu0 %v1531_v33 }
  0xd6   : > { %1460 = vmatmul.mubr.msk.bf16.gmra.mxu0 %vm865_vm10, %v1847_v57  ;;  %1071 = vmatprep.subr.bf16.mxu1 %v1423_v20 }
  0xd7   : > { %v1532_v36 = vld [vmem:[#allocation2 + $0x68] ss:$36 sps:$4 sm:$0xff]   ;;  %1485 = vmatprep.mubr.msk.bf16.mxu0 %vm865_vm10, %v1808_v35  ;;  %1072 = vmatpush1.bf16.msra.mxu1 %v1422_v34  ;;  %v1533_v0 = vld [vmem:[#allocation2 + $0x20] ss:$36 sps:$4 sm:$0xff]  }
  0xd8   : > { %1480 = vmatpush3.bf16.msra.mxu0 %v1531_v33  ;;  %1073 = vmatprep.subr.bf16.mxu1 %v1414_v1 }
  0xd9   : > { %1481 = vmatprep.subr.bf16.mxu0 %v1532_v36 }
  0xdb   : > { %1074 = vmatpush1.bf16.msra.mxu1 %v1413_v23 }
  0xdc   : > { %1482 = vmatpush3.bf16.msra.mxu0 %v1532_v36  ;;  %v2002_v39 = vpop.permute.xlu0 %630  ;;  %v2006_v42 = vpop.permute.xlu1 %635 }
  0xdd   : > { %1483 = vmatprep.subr.bf16.mxu0 %v1533_v0 }
  0xde   : > { %1462 = vmatmul.mubr.msk.bf16.vlgmr.msra.gmra.mxu1 %vm865_vm10, %v1808_v35 }
  0xdf   : > { %1101 = vmatprep.mubr.bf16.mxu1 %v1566_v4 }
  0xe0   : > { %1484 = vmatpush3.bf16.msra.mxu0 %v1533_v0  ;;  %v2016_v44 = vpop.permute.xlu1 %640  ;;  %v2022_v55 = vpop.permute.xlu0 %645 }
  0xe3   : > { %1486 = vmatmul.mubr.msk.bf16.vlgmr.msra.gmra.mxu0 %vm865_vm10, %v1847_v57 }
  0xe6   : > { %1463 = vmatmul.mubr.msk.bf16.gmra.mxu1 %vm865_vm10, %v1847_v57 }
 0x16e   : > { %v934_v3 = vpop.f32.mrf.mxu0 }
 0x16f   : > { %v935_v41 = vadd.f32 %v934_v3, %v2002_v39 }
 0x170   : > { %v936_v38 = vpop.f32.mrf.mxu0 }
 0x171   : > { %v937_v4 = vadd.f32 %v936_v38, %v2002_v39  ;;  %vm1161_vm11 = vcmp.ge.f32.partialorder %v935_v41, 0.0  ;;  %v1197_v35 = vmul.f32 0.25, %v935_v41 }
 0x172   : > { %v938_v57 = vpop.f32.mrf.mxu0 }
 0x173   : > { %vm1162_vm12 = vcmp.ge.f32.partialorder %v937_v4, 0.0  ;;  %v1198_v29 = vmul.f32 0.25, %v937_v4  ;;  %v1233_v37 = vsel %vm1161_vm11, %v935_v41, %v1197_v35  ;;  %v939_v43 = vadd.f32 %v938_v57, %v2006_v42 }
 0x174   : > { %1269 = vst [vmem:[%s2011_s20] sm:$0xff] %v1233_v37  ;;  %v940_v40 = vpop.f32.mrf.mxu0 }
 0x175   : > { %v1234_v46 = vsel %vm1162_vm12, %v937_v4, %v1198_v29  ;;  %vm1170_vm13 = vcmp.ge.f32.partialorder %v939_v43, 0.0  ;;  %v1206_v47 = vmul.f32 0.25, %v939_v43  ;;  %v941_v49 = vadd.f32 %v940_v40, %v2006_v42 }
 0x176   : > { %1270 = vst [vmem:[%s2011_s20 + $0x8] sm:$0xff] %v1234_v46  ;;  %v944_v50 = vpop.f32.mrf.mxu0 }
 0x177   : > { %v1242_v48 = vsel %vm1170_vm13, %v939_v43, %v1206_v47  ;;  %vm1171_vm14 = vcmp.ge.f32.partialorder %v941_v49, 0.0  ;;  %v1207_v31 = vmul.f32 0.25, %v941_v49  ;;  %v945_v52 = vadd.f32 %v944_v50, %v2016_v44 }
 0x178   : > { %1279 = vst [vmem:[%s2011_s20 + $0x48] sm:$0xff] %v1242_v48  ;;  %v946_v54 = vpop.f32.mrf.mxu0 }
 0x179   : > { %v1243_v56 = vsel %vm1171_vm14, %v941_v49, %v1207_v31  ;;  %v947_v45 = vadd.f32 %v946_v54, %v2016_v44  ;;  %vm1179_vm15 = vcmp.ge.f32.partialorder %v945_v52, 0.0  ;;  %v1215_v58 = vmul.f32 0.25, %v945_v52 }
 0x17a   : > { %1280 = vst [vmem:[%s2011_s20 + $0x50] sm:$0xff] %v1243_v56  ;;  %v948_v60 = vpop.f32.mrf.mxu0 }
 0x17b   : > { %v949_v61 = vadd.f32 %v948_v60, %v2022_v55  ;;  %vm1180_vm0 = vcmp.ge.f32.partialorder %v947_v45, 0.0  ;;  %v1216_v63 = vmul.f32 0.25, %v947_v45  ;;  %v1251_v6 = vsel %vm1179_vm15, %v945_v52, %v1215_v58 }
 0x17c   : > { %1288 = vst [vmem:[%s2011_s20 + $0x90] sm:$0xff] %v1251_v6  ;;  %v950_v62 = vpop.f32.mrf.mxu0 }
 0x17d   : > { %vm1188_vm1 = vcmp.ge.f32.partialorder %v949_v61, 0.0  ;;  %v1224_v7 = vmul.f32 0.25, %v949_v61  ;;  %v1252_v51 = vsel %vm1180_vm0, %v947_v45, %v1216_v63  ;;  %v951_v59 = vadd.f32 %v950_v62, %v2022_v55 }
 0x17e   : > { %1289 = vst [vmem:[%s2011_s20 + $0x98] sm:$0xff] %v1252_v51 }
 0x17f   : > { %v1260_v8 = vsel %vm1188_vm1, %v949_v61, %v1224_v7  ;;  %vm1189_vm2 = vcmp.ge.f32.partialorder %v951_v59, 0.0  ;;  %v1225_v2 = vmul.f32 0.25, %v951_v59 }
 0x180   : > { %1297 = vst [vmem:[%s2011_s20 + $0xd8] sm:$0xff] %v1260_v8 }
 0x181   : > { %v1261_v5 = vsel %vm1189_vm2, %v951_v59, %v1225_v2 }
 0x182   : > { %v987_v9 = vpop.f32.mrf.mxu1  ;;  %1298 = vst [vmem:[%s2011_s20 + $0xe0] sm:$0xff] %v1261_v5 }
 0x183   : > { %v988_v10 = vadd.f32 %v987_v9, %v2002_v39 }
 0x184   : > { %v989_v12 = vpop.f32.mrf.mxu1 }
 0x185   : > { %vm1163_vm3 = vcmp.ge.f32.partialorder %v988_v10, 0.0  ;;  %v1199_v13 = vmul.f32 0.25, %v988_v10  ;;  %v990_v53 = vadd.f32 %v989_v12, %v2002_v39 }
 0x186   : > { %v991_v17 = vpop.f32.mrf.mxu1 }
 0x187   : > { %v1235_v11 = vsel %vm1163_vm3, %v988_v10, %v1199_v13  ;;  %vm1164_vm4 = vcmp.ge.f32.partialorder %v990_v53, 0.0  ;;  %v1200_v18 = vmul.f32 0.25, %v990_v53  ;;  %v992_v21 = vadd.f32 %v991_v17, %v2006_v42 }
 0x188   : > { %1271 = vst [vmem:[%s2011_s20 + $0x10] sm:$0xff] %v1235_v11  ;;  %v993_v15 = vpop.f32.mrf.mxu1 }
 0x189   : > { %v1236_v22 = vsel %vm1164_vm4, %v990_v53, %v1200_v18  ;;  %vm1172_vm5 = vcmp.ge.f32.partialorder %v992_v21, 0.0  ;;  %v1208_v19 = vmul.f32 0.25, %v992_v21  ;;  %v994_v27 = vadd.f32 %v993_v15, %v2006_v42 }
 0x18a   : > { %1272 = vst [vmem:[%s2011_s20 + $0x18] sm:$0xff] %v1236_v22  ;;  %v997_v16 = vpop.f32.mrf.mxu1 }
 0x18b   : > { %v1244_v26 = vsel %vm1172_vm5, %v992_v21, %v1208_v19  ;;  %vm1173_vm6 = vcmp.ge.f32.partialorder %v994_v27, 0.0  ;;  %v1209_v30 = vmul.f32 0.25, %v994_v27  ;;  %v998_v24 = vadd.f32 %v997_v16, %v2016_v44 }
 0x18c   : > { %1281 = vst [vmem:[%s2011_s20 + $0x58] sm:$0xff] %v1244_v26  ;;  %v999_v25 = vpop.f32.mrf.mxu1 }
 0x18d   : > { %v1245_v14 = vsel %vm1173_vm6, %v994_v27, %v1209_v30  ;;  %vm1181_vm7 = vcmp.ge.f32.partialorder %v998_v24, 0.0  ;;  %v1217_v28 = vmul.f32 0.25, %v998_v24  ;;  %v1000_v32 = vadd.f32 %v999_v25, %v2016_v44 }
 0x18e   : > { %1282 = vst [vmem:[%s2011_s20 + $0x60] sm:$0xff] %v1245_v14  ;;  %v1040_v33 = vpop.f32.mrf.mxu0  ;;  %v1001_v34 = vpop.f32.mrf.mxu1 }
 0x18f   : > { %v1253_v20 = vsel %vm1181_vm7, %v998_v24, %v1217_v28  ;;  %v1041_v1 = vadd.f32 %v1040_v33, %v2002_v39  ;;  %vm1182_vm8 = vcmp.ge.f32.partialorder %v1000_v32, 0.0  ;;  %v1218_v36 = vmul.f32 0.25, %v1000_v32 }
 0x190   : > { %1290 = vst [vmem:[%s2011_s20 + $0xa0] sm:$0xff] %v1253_v20  ;;  %v1042_v23 = vpop.f32.mrf.mxu0  ;;  %v1002_v0 = vadd.f32 %v1001_v34, %v2022_v55  ;;  %v1003_v3 = vpop.f32.mrf.mxu1  ;;  %vm1277_vm7 = vcmask 523264  }
 0x191   : > { %vm1165_vm9 = vcmp.ge.f32.partialorder %v1041_v1, 0.0  ;;  %v1201_v41 = vmul.f32 0.25, %v1041_v1  ;;  %v1254_v38 = vsel %vm1182_vm8, %v1000_v32, %v1218_v36  ;;  %v1043_v4 = vadd.f32 %v1042_v23, %v2002_v39 }
 0x192   : > { %1291 = vst [vmem:[%s2011_s20 + $0xa8] sm:$0xff] %v1254_v38  ;;  %vm1190_vm10 = vcmp.ge.f32.partialorder %v1002_v0, 0.0  ;;  %v1226_v35 = vmul.f32 0.25, %v1002_v0  ;;  %v1044_v57 = vpop.f32.mrf.mxu0  ;;  %v1004_v29 = vadd.f32 %v1003_v3, %v2022_v55 }
 0x193   : > { %v1237_v37 = vsel %vm1165_vm9, %v1041_v1, %v1201_v41  ;;  %vm1166_vm11 = vcmp.ge.f32.partialorder %v1043_v4, 0.0  ;;  %v1202_v43 = vmul.f32 0.25, %v1043_v4  ;;  %v1045_v40 = vadd.f32 %v1044_v57, %v2006_v42 }
 0x194   : > { %1273 = vst [vmem:[%s2011_s20 + $0x20] sm:$0xff] %v1237_v37  ;;  %v1262_v46 = vsel %vm1190_vm10, %v1002_v0, %v1226_v35  ;;  %vm1191_vm12 = vcmp.ge.f32.partialorder %v1004_v29, 0.0  ;;  %v1227_v47 = vmul.f32 0.25, %v1004_v29  ;;  %v1046_v49 = vpop.f32.mrf.mxu0 }
 0x195   : > { %v1238_v50 = vsel %vm1166_vm11, %v1043_v4, %v1202_v43  ;;  %1299 = vst [vmem:[%s2011_s20 + $0xe8] sm:$0xff] %v1262_v46  ;;  %vm1174_vm13 = vcmp.ge.f32.partialorder %v1045_v40, 0.0  ;;  %v1210_v48 = vmul.f32 0.25, %v1045_v40  ;;  %v1047_v31 = vadd.f32 %v1046_v49, %v2006_v42 }
 0x196   : > { %1274 = vst [vmem:[%s2011_s20 + $0x28] sm:$0xff] %v1238_v50  ;;  %v1263_v52 = vsel %vm1191_vm12, %v1004_v29, %v1227_v47  ;;  %v1050_v54 = vpop.f32.mrf.mxu0 }
 0x197   : > { %v1246_v56 = vsel %vm1174_vm13, %v1045_v40, %v1210_v48  ;;  %1300 = vst [vmem:[%s2011_s20 + $0xf0] sm:$0xff] %v1263_v52  ;;  %vm1175_vm14 = vcmp.ge.f32.partialorder %v1047_v31, 0.0  ;;  %v1211_v45 = vmul.f32 0.25, %v1047_v31  ;;  %v1051_v58 = vadd.f32 %v1050_v54, %v2016_v44 }
 0x198   : > { %1283 = vst [vmem:[%s2011_s20 + $0x68] sm:$0xff] %v1246_v56  ;;  %v1052_v60 = vpop.f32.mrf.mxu0 }
 0x199   : > { %v1247_v61 = vsel %vm1175_vm14, %v1047_v31, %v1211_v45  ;;  %vm1183_vm15 = vcmp.ge.f32.partialorder %v1051_v58, 0.0  ;;  %v1219_v63 = vmul.f32 0.25, %v1051_v58  ;;  %v1053_v6 = vadd.f32 %v1052_v60, %v2016_v44 }
 0x19a   : > { %1284 = vst [vmem:[%s2011_s20 + $0x70] sm:$0xff] %v1247_v61  ;;  %v1054_v62 = vpop.f32.mrf.mxu0 }
 0x19b   : > { %v1255_v7 = vsel %vm1183_vm15, %v1051_v58, %v1219_v63  ;;  %vm1184_vm0 = vcmp.ge.f32.partialorder %v1053_v6, 0.0  ;;  %v1220_v51 = vmul.f32 0.25, %v1053_v6  ;;  %v1055_v59 = vadd.f32 %v1054_v62, %v2022_v55 }
 0x19c   : > { %1292 = vst [vmem:[%s2011_s20 + $0xb0] sm:$0xff] %v1255_v7  ;;  %v1056_v8 = vpop.f32.mrf.mxu0 }
 0x19d   : > { %v1256_v2 = vsel %vm1184_vm0, %v1053_v6, %v1220_v51  ;;  %vm1192_vm1 = vcmp.ge.f32.partialorder %v1055_v59, 0.0  ;;  %v1228_v5 = vmul.f32 0.25, %v1055_v59  ;;  %v1057_v9 = vadd.f32 %v1056_v8, %v2022_v55 }
 0x19e   : > { %1293 = vst [vmem:[%s2011_s20 + $0xb8] sm:$0xff] %v1256_v2  ;;  %v1093_v13 = vpop.f32.mrf.mxu1 }
 0x19f   : > { %v1264_v10 = vsel %vm1192_vm1, %v1055_v59, %v1228_v5  ;;  %vm1193_vm2 = vcmp.ge.f32.partialorder %v1057_v9, 0.0  ;;  %v1229_v12 = vmul.f32 0.25, %v1057_v9  ;;  %v1094_v53 = vadd.f32 %v1093_v13, %v2002_v39 }
 0x1a0   : > { %1301 = vst [vmem:[%s2011_s20 + $0xf8] sm:$0xff] %v1264_v10  ;;  %v1095_v11 = vpop.f32.mrf.mxu1 }
 0x1a1   : > { %v1265_v17 = vsel %vm1193_vm2, %v1057_v9, %v1229_v12  ;;  %vm1167_vm3 = vcmp.ge.f32.partialorder %v1094_v53, 0.0  ;;  %v1203_v18 = vmul.f32 0.25, %v1094_v53  ;;  %v1096_v21 = vadd.f32 %v1095_v11, %v2002_v39 }
 0x1a2   : > { %1302 = vst [vmem:[%s2011_s20 + $0x100] sm:$0xff] %v1265_v17  ;;  %v1097_v15 = vpop.f32.mrf.mxu1 }
 0x1a3   : > { %v1239_v22 = vsel %vm1167_vm3, %v1094_v53, %v1203_v18  ;;  %vm1168_vm4 = vcmp.ge.f32.partialorder %v1096_v21, 0.0  ;;  %v1204_v19 = vmul.f32 0.25, %v1096_v21  ;;  %v1098_v27 = vadd.f32 %v1097_v15, %v2006_v42  ;;  %v1487_v16 = vpop.f32.mrf.mxu0 }
 0x1a4   : > { %1275 = vst [vmem:[%s2011_s20 + $0x30] sm:$0xff] %v1239_v22  ;;  %v1155_v26 = vadd.f32 %v1487_v16, %v2016_v44  ;;  %v1099_v30 = vpop.f32.mrf.mxu1 }
 0x1a5   : > { %v1240_v24 = vsel %vm1168_vm4, %v1096_v21, %v1204_v19  ;;  %vm1176_vm5 = vcmp.ge.f32.partialorder %v1098_v27, 0.0  ;;  %v1212_v25 = vmul.f32 0.25, %v1098_v27  ;;  %v1100_v14 = vadd.f32 %v1099_v30, %v2006_v42  ;;  %v1146_v28 = vpop.f32.mrf.mxu0 }
 0x1a6   : > { %1276 = vst [vmem:[%s2011_s20 + $0x38] sm:$0xff] %v1240_v24  ;;  %vm1187_vm6 = vcmp.ge.f32.partialorder %v1155_v26, 0.0  ;;  %v1223_v32 = vmul.f32 0.25, %v1155_v26  ;;  %v1147_v33 = vadd.f32 %v1146_v28, %v2002_v39  ;;  %v1103_v34 = vpop.f32.mrf.mxu1 }
 0x1a7   : > { %v1248_v20 = vsel %vm1176_vm5, %v1098_v27, %v1212_v25  ;;  %vm1177_vm8 = vcmp.ge.f32.partialorder %v1100_v14, 0.0  ;;  %v1213_v1 = vmul.f32 0.25, %v1100_v14  ;;  %v1104_v36 = vadd.f32 %v1103_v34, %v2016_v44  ;;  %v1488_v23 = vpop.f32.mrf.mxu0 }
 0x1a8   : > { %1285 = vst [vmem:[%s2011_s20 + $0x78] sm:$0xff] %v1248_v20  ;;  %v1259_v0 = vsel %vm1187_vm6, %v1155_v26, %v1223_v32  ;;  %vm1169_vm9 = vcmp.ge.f32.partialorder %v1147_v33, 0.0  ;;  %v1205_v3 = vmul.f32 0.25, %v1147_v33  ;;  %v1158_v41 = vadd.f32 %v1488_v23, %v2022_v55  ;;  %v1105_v38 = vpop.f32.mrf.mxu1 }
 0x1a9   : > { %1296 = vst.msk [vmem:[%s2011_s20 + $0xd0] sm:$0xff] %vm1277_vm7, %v1259_v0  ;;  %v1249_v4 = vsel %vm1177_vm8, %v1100_v14, %v1213_v1  ;;  %vm1185_vm10 = vcmp.ge.f32.partialorder %v1104_v36, 0.0  ;;  %v1221_v39 = vmul.f32 0.25, %v1104_v36  ;;  %v1106_v35 = vadd.f32 %v1105_v38, %v2016_v44  ;;  %v1149_v57 = vpop.f32.mrf.mxu0 }
 0x1aa   : > { %1286 = vst [vmem:[%s2011_s20 + $0x80] sm:$0xff] %v1249_v4  ;;  %v1241_v29 = vsel %vm1169_vm9, %v1147_v33, %v1205_v3  ;;  %vm1196_vm11 = vcmp.ge.f32.partialorder %v1158_v41, 0.0  ;;  %v1232_v37 = vmul.f32 0.25, %v1158_v41  ;;  %v1150_v43 = vadd.f32 %v1149_v57, %v2006_v42  ;;  %v1107_v40 = vpop.f32.mrf.mxu1 }
 0x1ab   : > { %1278 = vst.msk [vmem:[%s2011_s20 + $0x40] sm:$0xff] %vm1277_vm7, %v1241_v29  ;;  %v1257_v46 = vsel %vm1185_vm10, %v1104_v36, %v1221_v39  ;;  %vm1186_vm12 = vcmp.ge.f32.partialorder %v1106_v35, 0.0  ;;  %v1222_v47 = vmul.f32 0.25, %v1106_v35  ;;  %v1108_v49 = vadd.f32 %v1107_v40, %v2022_v55 }
 0x1ac   : > { %1294 = vst [vmem:[%s2011_s20 + $0xc0] sm:$0xff] %v1257_v46  ;;  %v1268_v44 = vsel %vm1196_vm11, %v1158_v41, %v1232_v37  ;;  %vm1178_vm13 = vcmp.ge.f32.partialorder %v1150_v43, 0.0  ;;  %v1214_v50 = vmul.f32 0.25, %v1150_v43  ;;  %v1109_v48 = vpop.f32.mrf.mxu1 }
 0x1ad   : > { %1305 = vst.msk [vmem:[%s2011_s20 + $0x118] sm:$0xff] %vm1277_vm7, %v1268_v44  ;;  %v1258_v42 = vsel %vm1186_vm12, %v1106_v35, %v1222_v47  ;;  %vm1194_vm14 = vcmp.ge.f32.partialorder %v1108_v49, 0.0  ;;  %v1230_v31 = vmul.f32 0.25, %v1108_v49  ;;  %v1110_v52 = vadd.f32 %v1109_v48, %v2022_v55 }
 0x1ae   : > { %1295 = vst [vmem:[%s2011_s20 + $0xc8] sm:$0xff] %v1258_v42  ;;  %v1250_v54 = vsel %vm1178_vm13, %v1150_v43, %v1214_v50 }
 0x1af   : > { %1287 = vst.msk [vmem:[%s2011_s20 + $0x88] sm:$0xff] %vm1277_vm7, %v1250_v54  ;;  %v1266_v56 = vsel %vm1194_vm14, %v1108_v49, %v1230_v31  ;;  %vm1195_vm15 = vcmp.ge.f32.partialorder %v1110_v52, 0.0  ;;  %v1231_v45 = vmul.f32 0.25, %v1110_v52 }
 0x1b0   : > { %1303 = vst [vmem:[%s2011_s20 + $0x108] sm:$0xff] %v1266_v56 }
 0x1b1   : > { %v1267_v58 = vsel %vm1195_vm15, %v1110_v52, %v1231_v45 }
 0x1b2   : > { %1304 = vst [vmem:[%s2011_s20 + $0x110] sm:$0xff] %v1267_v58 }
 0x1b3 PF: > { %s13_s14 = sadd.s32 1, %s1556_s14   ;;  %s2105_s12 = smov %s1552_s13 }
 0x1b4   : > { %p10_p5 = scmp.ge.s32.totalorder %s13_s14, 4   ;;  %s2106_s13 = smov %s2108_s15 }
 0x1b6   :  { %12 = sbr.rel (!%p10_p5) target bundleno = 2 (0x2), region = 62 }

// kernel: _lambda_.5
= control target key start
LH: loop header
LB: loop body
LE: loop exit
PB: predicated region body
PF: predicated region fallthrough
CT: control target
= control target key end

     0   :  { %s2234_s12 = smov 0   ;;  %s2236_s13 = smov 0   ;;  %s2931_s0 = inlined_call_operand.vmem [shape: bf16[2,2,8,2246], index: 0, kind: input, shape index: {}]   ;;  %s2932_s1 = inlined_call_operand.vmem [shape: bf16[2,72], index: 1, kind: input, shape index: {}]   ;;  %s2933_s2 = inlined_call_operand.vmem [shape: f32[2,1], index: 2, kind: input, shape index: {}]   ;;  %s2934_s3 = inlined_call_operand.vmem [shape: f32[2,2,2,2112], index: 3, kind: output, shape index: {}]  }
   0x1   :  { %s2238_s14 = smov 0   ;;  %s2240_s15 = smov 0  }
   0x2   :  { %s2242_s16 = smov 0  }
   0x3 LB: > { %s22_s17 = sadd.s32 1, %s2192_s14  ;;  %s25_s18 = sadd.s32 1, %s2196_s15  ;;  %s2200_s16 = sphi %s2242_s16, %s13_s16   ;;  %s2196_s15 = sphi %s2240_s15, %s2938_s15   ;;  %s2192_s14 = sphi %s2238_s14, %s2937_s14   ;;  %s2188_s13 = sphi %s2236_s13, %s2936_s13   ;;  %s2184_s12 = sphi %s2234_s12, %s2935_s12  }
   0x4   : > { %p23_p0 = scmp.ge.s32.totalorder %s22_s17, 2  ;;  %p1972_p1 = scmp.ge.s32.totalorder %s2200_s16, 1 }
   0x5   : > { %p157_p2 = scmp.lt.s32.totalorder %s2200_s16, 5 }
   0x6   : > { %s2940_s17 = smov (%p23_p0, %s22_s17), 0  ;;  %s2942_s18 = smov (!%p23_p0, %s25_s18), %s2196_s15 }
   0x7   : > { %p158_p3 = pnand %p1972_p1, %p157_p2  ;;  %p27_p4 = scmp.ge.s32.totalorder %s2942_s18, 2 }
   0x8   : > { %p189_p5 = scmp.lt.s32.totalorder (!%p158_p3), %s2188_s13, 1  ;;  %p191_p6 = scmp.lt.s32.totalorder (!%p158_p3), %s2184_s12, 1 }
   0x9   : > { %s2944_s18 = smov (%p27_p4, %s2942_s18), 0  ;;  %161 = sbr.rel (%p158_p3) target bundleno = 495 (0x1ef), region = 32 }
   0xa   : > { %s2202_s26 = smov (!%p158_p3), 122   ;;  %s2203_s27 = smov (!%p158_p3), 124  }
   0xb   : > { %s2204_s28 = smov (!%p158_p3), 123   ;;  %s2205_s29 = smov (!%p158_p3), 61  }
   0xc   : > { %s2206_s30 = smov (!%p158_p3), 60   ;;  %s2207_s4 = smov (!%p158_p3), 126  }
   0xd   : > { %s2208_s5 = smov (!%p158_p3), 62   ;;  %s2209_s6 = smov (!%p158_p3), 127  }
   0xe   : > { %s2946_s13 = smov (!%p189_p5, %s2188_s13), 1  ;;  %s2948_s12 = smov (!%p191_p6, %s2184_s12), 1  ;;  %v2210_v8 = vmov 0   ;;  %vm272_vm0 = vcmask 1043456   ;;  %vm837_vm1 = vcmask 998400   ;;  %vm677_vm2 = vcmask 1014784  }
   0xf   : > { %s2100_s19 = smul.u32 36, %s2946_s13  ;;  %1434 = vmatprep.mubr.bf16.mxu0 %v2210_v8  ;;  %1475 = vmatprep.mubr.bf16.mxu1 %v2210_v8  ;;  %vm757_vm3 = vcmask 1006592   ;;  %vm515_vm4 = vcmask 498688   ;;  %vm596_vm5 = vcmask 490496   ;;  %vm225_vm6 = vcmask 519168  }
  0x10   : > { %s2099_s20 = smul.u32 18, %s2948_s12  ;;  %2155 = vset.pattern.permute.xlu0 %v2210_v8  ;;  %vm354_vm7 = vcmask 1031168   ;;  %vm434_vm8 = vcmask 506880   ;;  %vm274_vm9 = vcmask 1039360   ;;  %vm1346_vm10 = vcmask 588800  }
  0x11   : > { %vm2212_vm11 = vmmov 0   ;;  %s2101_s11 = smul.u32 17, %s2948_s12  ;;  %vm1871_vm12 = vcmask 517120  }
  0x12   : > { %s195_s21 = sadd.s32 %s2100_s19, %s2099_s20  ;;  %s2102_s19 = smul.u32 34, %s2946_s13 }
  0x13   : > { %s1973_s22 = sshll.u32 %s195_s21, 2 }
  0x14   : > { %s2273_s25 = scalar_lea.vmem %s2931_s0, %s1973_s22  ;;  %s204_s20 = sadd.s32 %s2102_s19, %s2101_s11 }
  0x15   : > { %v791_v0 = vld [vmem:[%s2273_s25 + $0x4] sm:$0xff]  ;;  %v792_v3 = vld [vmem:[%s2273_s25 + $0xc] sm:$0xff]  ;;  %v2289_v5 = vld [vmem:[%s2273_s25 + $0x18] sm:$0xff]  ;;  %s1974_s21 = sshll.u32 %s204_s20, 1 }
  0x16   : > { %v2277_v1 = vld [vmem:[%s2273_s25 + $0x8] sm:$0xff]  ;;  %809 = vrot.lane.b32.xlu0 %v791_v0, %s2202_s26  ;;  %649 = vrot.lane.b32.xlu1 %v791_v0, %s2203_s27  ;;  %v2282_v2 = vld [vmem:[%s2273_s25] sm:$0xff]  ;;  %s2889_s22 = scalar_lea.vmem %s2934_s3, %s1974_s21 }
  0x17   : > { %v2286_v4 = vld [vmem:[%s2273_s25 + $0x10] sm:$0xff]  ;;  %v2292_v6 = vld [vmem:[%s2273_s25 + $0x20] sm:$0xff]  ;;  %v474_v12 = vld [vmem:[%s2273_s25 + $0x28] sm:$0xff] }
  0x18   : > { %v793_v7 = vld [vmem:[%s2273_s25 + $0x14] sm:$0xff]  ;;  %v794_v9 = vld [vmem:[%s2273_s25 + $0x1c] sm:$0xff]  ;;  %v795_v10 = vld [vmem:[%s2273_s25 + $0x24] sm:$0xff] }
  0x19   : > { %v796_v11 = vld [vmem:[%s2273_s25 + $0x2c] sm:$0xff]  ;;  %v797_v13 = vld [vmem:[%s2273_s25 + $0x34] sm:$0xff]  ;;  %v798_v14 = vld [vmem:[%s2273_s25 + $0x3c] sm:$0xff] }
  0x1a   : > { %811 = vrot.lane.b32.xlu0 %v792_v3, %s2202_s26  ;;  %651 = vrot.lane.b32.xlu1 %v792_v3, %s2203_s27  ;;  %v475_v15 = vld [vmem:[%s2273_s25 + $0x30] sm:$0xff]  ;;  %v2385_v16 = vld [vmem:[%s2273_s25 + $0x28] sm:$0xff] }
  0x1b   : > { %v476_v17 = vld [vmem:[%s2273_s25 + $0x38] sm:$0xff]  ;;  %v2399_v26 = vld [vmem:[%s2273_s25 + $0x30] sm:$0xff]  ;;  %v799_v29 = vld [vmem:[%s2273_s25 + $0x44] sm:$0xf] }
  0x1c   : > { %v639_v39 = vld [vmem:[%s2273_s25 + $0x44] sm:$0xf]  ;;  %v215_v56 = vld [vmem:[%s2273_s25 + $0x38] sm:$0xff]  ;;  %v216_v57 = vld [vmem:[%s2273_s25 + $0x40] sm:$0xf] }
  0x1d   : > { %v719_v49 = vld [vmem:[%s2273_s25 + $0x44] sm:$0xf]  ;;  %224 = vst [vmem:[#allocation2 + $0x38] sm:$0xff] %v215_v56  ;;  %226 = vst.msk [vmem:[#allocation2 + $0x40] sm:$0xf] %vm225_vm6, %v216_v57 }
  0x1e   : > { %729 = vrot.lane.b32.xlu0 %v791_v0, %s2204_s28  ;;  %731 = vrot.lane.b32.xlu1 %v792_v3, %s2204_s28  ;;  %v477_v50 = vld [vmem:[%s2273_s25 + $0x40] sm:$0xff] }
  0x1f   : > { %v316_v59 = vld [vmem:[%s2273_s25 + $0x40] sm:$0xf] }
  0x22   : > { %489 = vrot.lane.b32.xlu1 %v2277_v1, %s2205_s29  ;;  %487 = vrot.lane.b32.xlu0 %v2282_v2, %s2205_s29 }
  0x26   : > { %570 = vrot.lane.b32.xlu1 %v2277_v1, %s2206_s30  ;;  %568 = vrot.lane.b32.xlu0 %v2282_v2, %s2206_s30 }
  0x2a   : > { %328 = vrot.lane.b32.xlu1 %v2277_v1, %s2207_s4  ;;  %326 = vrot.lane.b32.xlu0 %v2282_v2, %s2207_s4 }
  0x2e   : > { %408 = vrot.lane.b32.xlu1 %v2277_v1, %s2208_s5  ;;  %406 = vrot.lane.b32.xlu0 %v2282_v2, %s2208_s5 }
  0x32   : > { %813 = vrot.lane.b32.xlu0 %v793_v7, %s2202_s26  ;;  %245 = vrot.lane.b32.xlu1 %v2282_v2, %s2209_s6 }
  0x36   : > { %247 = vrot.lane.b32.xlu0 %v2277_v1, %s2209_s6  ;;  %653 = vrot.lane.b32.xlu1 %v793_v7, %s2203_s27 }
  0x3a   : > { %733 = vrot.lane.b32.xlu0 %v793_v7, %s2204_s28  ;;  %815 = vrot.lane.b32.xlu1 %v794_v9, %s2202_s26 }
  0x3e   : > { %491 = vrot.lane.b32.xlu0 %v2286_v4, %s2205_s29  ;;  %572 = vrot.lane.b32.xlu1 %v2286_v4, %s2206_s30 }
  0x42   : > { %655 = vrot.lane.b32.xlu0 %v794_v9, %s2203_s27  ;;  %735 = vrot.lane.b32.xlu1 %v794_v9, %s2204_s28 }
  0x46   : > { %330 = vrot.lane.b32.xlu0 %v2286_v4, %s2207_s4  ;;  %410 = vrot.lane.b32.xlu1 %v2286_v4, %s2208_s5 }
  0x4a   : > { %493 = vrot.lane.b32.xlu0 %v2289_v5, %s2205_s29  ;;  %574 = vrot.lane.b32.xlu1 %v2289_v5, %s2206_s30 }
  0x4e   : > { %249 = vrot.lane.b32.xlu0 %v2286_v4, %s2209_s6  ;;  %332 = vrot.lane.b32.xlu1 %v2289_v5, %s2207_s4 }
  0x52   : > { %412 = vrot.lane.b32.xlu0 %v2289_v5, %s2208_s5  ;;  %817 = vrot.lane.b32.xlu1 %v795_v10, %s2202_s26 }
  0x56   : > { %251 = vrot.lane.b32.xlu0 %v2289_v5, %s2209_s6  ;;  %657 = vrot.lane.b32.xlu1 %v795_v10, %s2203_s27 }
  0x5a   : > { %737 = vrot.lane.b32.xlu0 %v795_v10, %s2204_s28  ;;  %819 = vrot.lane.b32.xlu1 %v796_v11, %s2202_s26  ;;  %v235_v10 = vld [vmem:[%s2273_s25 + $0x40] sm:$0xf] }
  0x5e   : > { %495 = vrot.lane.b32.xlu0 %v2292_v6, %s2205_s29  ;;  %576 = vrot.lane.b32.xlu1 %v2292_v6, %s2206_s30 }
  0x62   : > { %659 = vrot.lane.b32.xlu0 %v796_v11, %s2203_s27  ;;  %739 = vrot.lane.b32.xlu1 %v796_v11, %s2204_s28 }
  0x66   : > { %334 = vrot.lane.b32.xlu0 %v2292_v6, %s2207_s4  ;;  %414 = vrot.lane.b32.xlu1 %v2292_v6, %s2208_s5 }
  0x6a   : > { %497 = vrot.lane.b32.xlu0 %v474_v12, %s2205_s29  ;;  %578 = vrot.lane.b32.xlu1 %v474_v12, %s2206_s30 }
  0x6e   : > { %253 = vrot.lane.b32.xlu0 %v2292_v6, %s2209_s6  ;;  %336 = vrot.lane.b32.xlu1 %v474_v12, %s2207_s4 }
  0x72   : > { %416 = vrot.lane.b32.xlu0 %v474_v12, %s2208_s5  ;;  %821 = vrot.lane.b32.xlu1 %v797_v13, %s2202_s26 }
  0x76   : > { %255 = vrot.lane.b32.xlu0 %v474_v12, %s2209_s6  ;;  %661 = vrot.lane.b32.xlu1 %v797_v13, %s2203_s27 }
  0x7a   : > { %741 = vrot.lane.b32.xlu0 %v797_v13, %s2204_s28  ;;  %823 = vrot.lane.b32.xlu1 %v798_v14, %s2202_s26 }
  0x7e   : > { %499 = vrot.lane.b32.xlu0 %v475_v15, %s2205_s29  ;;  %580 = vrot.lane.b32.xlu1 %v475_v15, %s2206_s30 }
  0x82   : > { %663 = vrot.lane.b32.xlu0 %v798_v14, %s2203_s27  ;;  %743 = vrot.lane.b32.xlu1 %v798_v14, %s2204_s28 }
  0x86   : > { %338 = vrot.lane.b32.xlu0 %v475_v15, %s2207_s4  ;;  %418 = vrot.lane.b32.xlu1 %v475_v15, %s2208_s5 }
  0x88   : > { %v810_v18 = vpop.permute.xlu0 %809  ;;  %v650_v19 = vpop.permute.xlu1 %649 }
  0x89   : > { %v667_v20 = vrot.slane %v650_v19, 4  ;;  %v827_v23 = vrot.slane %v810_v18, 4 }
  0x8a   : > { %501 = vrot.lane.b32.xlu0 %v476_v17, %s2205_s29  ;;  %582 = vrot.lane.b32.xlu1 %v476_v17, %s2206_s30 }
  0x8c   : > { %v2392_v21 = vpop.permute.xlu0 %811  ;;  %v2394_v22 = vpop.permute.xlu1 %651 }
  0x8d   : > { %v828_v24 = vrot.slane %v2392_v21, 4  ;;  %v668_v25 = vrot.slane %v2394_v22, 4 }
  0x8e   : > { %257 = vrot.lane.b32.xlu0 %v475_v15, %s2209_s6  ;;  %340 = vrot.lane.b32.xlu1 %v476_v17, %s2207_s4 }
  0x8f   : > { %v836_v27 = vsel %vm272_vm0, %v827_v23, %v828_v24  ;;  %v676_v28 = vsel %vm272_vm0, %v667_v20, %v668_v25 }
  0x90   : > { %v838_v30 = vsel %vm837_vm1, %v810_v18, %v836_v27  ;;  %v678_v31 = vsel %vm677_vm2, %v650_v19, %v676_v28  ;;  %v730_v32 = vpop.permute.xlu0 %729  ;;  %v2412_v33 = vpop.permute.xlu1 %731  ;;  %v953_v18 = vld [vmem:[%s2933_s2] sm:$0x3] }
  0x91   : > { %v747_v34 = vrot.slane %v730_v32, 4  ;;  %v748_v35 = vrot.slane %v2412_v33, 4  ;;  %v2044_v36 = vcombine.high %v838_v30, %v838_v30  ;;  %v2043_v37 = vcombine.low %v838_v30, %v838_v30 }
  0x92   : > { %420 = vrot.lane.b32.xlu0 %v476_v17, %s2208_s5  ;;  %825 = vrot.lane.b32.xlu1 %v799_v29, %s2202_s26 }
  0x93   : > { %v756_v38 = vsel %vm272_vm0, %v747_v34, %v748_v35  ;;  %2060 = vmatprep.subr.msk.bf16.mxu0 %vm272_vm0, %v2044_v36  ;;  %v1352_v40 = vsel %vm272_vm0, %v2043_v37, 0 }
  0x94   : > { %v758_v41 = vsel %vm757_vm3, %v730_v32, %v756_v38  ;;  %v2424_v42 = vpop.permute.xlu1 %489  ;;  %v488_v43 = vpop.permute.xlu0 %487  ;;  %1409 = vmatpush1.bf16.msra.mxu0 %v1352_v40 }
  0x95   : > { %v506_v44 = vrot.slane %v2424_v42, 4  ;;  %v505_v45 = vrot.slane %v488_v43, 4  ;;  %v2027_v46 = vcombine.high %v678_v31, %v758_v41  ;;  %v2026_v47 = vcombine.low %v678_v31, %v758_v41 }
  0x96   : > { %259 = vrot.lane.b32.xlu0 %v476_v17, %s2209_s6  ;;  %665 = vrot.lane.b32.xlu1 %v639_v39, %s2203_s27 }
  0x97   : > { %v514_v48 = vsel %vm272_vm0, %v505_v45, %v506_v44  ;;  %1410 = vmatprep.subr.bf16.mxu0 %v2027_v46 }
  0x98   : > { %v516_v51 = vsel %vm515_vm4, %v488_v43, %v514_v48  ;;  %v2435_v52 = vpop.permute.xlu1 %570  ;;  %v569_v53 = vpop.permute.xlu0 %568  ;;  %1411 = vmatpush1.bf16.msra.mxu0 %v2026_v47 }
  0x99   : > { %v587_v54 = vrot.slane %v2435_v52, 4  ;;  %v586_v55 = vrot.slane %v569_v53, 4 }
  0x9a   : > { %745 = vrot.lane.b32.xlu0 %v719_v49, %s2204_s28  ;;  %503 = vrot.lane.b32.xlu1 %v477_v50, %s2205_s29 }
  0x9b   : > { %v595_v58 = vsel %vm272_vm0, %v586_v55, %v587_v54 }
  0x9c   : > { %v597_v60 = vsel %vm596_vm5, %v569_v53, %v595_v58  ;;  %v2448_v61 = vpop.permute.xlu1 %328  ;;  %v327_v62 = vpop.permute.xlu0 %326 }
  0x9d   : > { %v345_v63 = vrot.slane %v2448_v61, 4  ;;  %v344_v0 = vrot.slane %v327_v62, 4  ;;  %v2010_v3 = vcombine.high %v516_v51, %v597_v60  ;;  %v2009_v7 = vcombine.low %v516_v51, %v597_v60 }
  0x9e   : > { %584 = vrot.lane.b32.xlu0 %v477_v50, %s2206_s30  ;;  %342 = vrot.lane.b32.xlu1 %v316_v59, %s2207_s4 }
  0x9f   : > { %v353_v9 = vsel %vm272_vm0, %v344_v0, %v345_v63  ;;  %1412 = vmatprep.subr.bf16.mxu0 %v2010_v3 }
  0xa0   : > { %v355_v11 = vsel %vm354_vm7, %v327_v62, %v353_v9  ;;  %v2458_v12 = vpop.permute.xlu1 %408  ;;  %v407_v13 = vpop.permute.xlu0 %406  ;;  %1413 = vmatpush1.bf16.msra.mxu0 %v2009_v7 }
  0xa1   : > { %v425_v14 = vrot.slane %v2458_v12, 4  ;;  %v424_v15 = vrot.slane %v407_v13, 4 }
  0xa2   : > { %422 = vrot.lane.b32.xlu0 %v477_v50, %s2208_s5  ;;  %261 = vrot.lane.b32.xlu1 %v235_v10, %s2209_s6 }
  0xa3   : > { %v433_v17 = vsel %vm272_vm0, %v424_v15, %v425_v14 }
  0xa4   : > { %v435_v19 = vsel %vm434_vm8, %v407_v13, %v433_v17  ;;  %v814_v20 = vpop.permute.xlu0 %813  ;;  %v246_v23 = vpop.permute.xlu1 %245 }
  0xa5   : > { %v829_v27 = vrot.slane %v814_v20, 4  ;;  %v1993_v28 = vcombine.high %v355_v11, %v435_v19  ;;  %v1992_v29 = vcombine.low %v355_v11, %v435_v19  ;;  %v263_v31 = vrot.slane %v246_v23, 4 }
  0xa6   : > { %956 = vperm.xlu0 %2155, %v953_v18  }
  0xa7   : > { %v839_v30 = vsel %vm272_vm0, %v828_v24, %v829_v27  ;;  %1414 = vmatprep.subr.bf16.mxu0 %v1993_v28 }
  0xa8   : > { %v840_v32 = vsel %vm837_vm1, %v2392_v21, %v839_v30  ;;  %v2475_v34 = vpop.permute.xlu0 %247  ;;  %v654_v36 = vpop.permute.xlu1 %653  ;;  %1415 = vmatpush1.bf16.msra.mxu0 %v1992_v29 }
  0xa9   : > { %v264_v37 = vrot.slane %v2475_v34, 4  ;;  %v669_v38 = vrot.slane %v654_v36, 4  ;;  %v2046_v39 = vcombine.high %v840_v32, %v840_v32  ;;  %v2045_v40 = vcombine.low %v840_v32, %v840_v32 }
  0xab   : > { %v273_v41 = vsel %vm272_vm0, %v263_v31, %v264_v37  ;;  %v679_v24 = vsel %vm272_vm0, %v668_v25, %v669_v38  ;;  %2062 = vmatprep.subr.msk.bf16.mxu1 %vm272_vm0, %v2046_v39  ;;  %v1358_v21 = vsel %vm272_vm0, %v2045_v40, 0 }
  0xac   : > { %v275_v43 = vsel %vm274_vm9, %v246_v23, %v273_v41  ;;  %v680_v45 = vsel %vm677_vm2, %v2394_v22, %v679_v24  ;;  %v734_v46 = vpop.permute.xlu0 %733  ;;  %v2489_v47 = vpop.permute.xlu1 %815  ;;  %1450 = vmatpush1.bf16.msra.mxu1 %v1358_v21 }
  0xad   : > { %v749_v48 = vrot.slane %v734_v46, 4  ;;  %v830_v49 = vrot.slane %v2489_v47, 4  ;;  %v1976_v50 = vcombine.high %v2282_v2, %v275_v43  ;;  %v1975_v25 = vcombine.low %v2282_v2, %v275_v43 }
  0xaf   : > { %v759_v51 = vsel %vm272_vm0, %v748_v35, %v749_v48  ;;  %v841_v53 = vsel %vm272_vm0, %v829_v27, %v830_v49  ;;  %1416 = vmatprep.subr.bf16.mxu0 %v1976_v50  ;;  %v2506_v35 = vld [vmem:[%s2932_s1] sm:$0x1] }
  0xb0   : > { %v760_v22 = vsel %vm757_vm3, %v2412_v33, %v759_v51  ;;  %v842_v55 = vsel %vm837_vm1, %v814_v20, %v841_v53  ;;  %v492_v56 = vpop.permute.xlu0 %491  ;;  %v573_v57 = vpop.permute.xlu1 %572  ;;  %1417 = vmatpush1.bf16.msra.mxu0 %v1975_v25 }
  0xb1   : > { %v507_v58 = vrot.slane %v492_v56, 4  ;;  %v588_v2 = vrot.slane %v573_v57, 4  ;;  %v2029_v59 = vcombine.high %v680_v45, %v760_v22  ;;  %v2048_v60 = vcombine.high %v842_v55, %v842_v55 }
  0xb2   : > { %v2028_v62 = vcombine.low %v680_v45, %v760_v22  ;;  %v2047_v0 = vcombine.low %v842_v55, %v842_v55 }
  0xb3   : > { %v517_v33 = vsel %vm272_vm0, %v506_v44, %v507_v58  ;;  %v598_v3 = vsel %vm272_vm0, %v587_v54, %v588_v2  ;;  %1451 = vmatprep.subr.bf16.mxu1 %v2029_v59  ;;  %2064 = vmatprep.subr.msk.bf16.mxu0 %vm272_vm0, %v2048_v60 }
  0xb4   : > { %v518_v7 = vsel %vm515_vm4, %v2424_v42, %v517_v33  ;;  %v599_v9 = vsel %vm596_vm5, %v2435_v52, %v598_v3  ;;  %v2519_v10 = vpop.permute.xlu0 %655  ;;  %v2521_v11 = vpop.permute.xlu1 %735  ;;  %1452 = vmatpush1.bf16.msra.mxu1 %v2028_v62  ;;  %2061 = vmatmul.mubr.msk.bf16.vlgmr.msra.gmra.mxu0 %vm1346_vm10, %v2506_v35  ;;  %v1364_v44 = vsel %vm272_vm0, %v2047_v0, 0 }
  0xb5   : > { %v670_v54 = vrot.slane %v2519_v10, 4  ;;  %v750_v13 = vrot.slane %v2521_v11, 4  ;;  %1491 = vmatpush1.bf16.msra.mxu0 %v1364_v44  ;;  %v2012_v15 = vcombine.high %v518_v7, %v599_v9  ;;  %v2011_v42 = vcombine.low %v518_v7, %v599_v9  ;;  %1516 = vmatprep.mubr.bf16.mxu0 %v2210_v8 }
  0xb7   : > { %v681_v52 = vsel %vm272_vm0, %v669_v38, %v670_v54  ;;  %v761_v17 = vsel %vm272_vm0, %v749_v48, %v750_v13  ;;  %1453 = vmatprep.subr.bf16.mxu1 %v2012_v15 }
  0xb8   : > { %v682_v18 = vsel %vm677_vm2, %v654_v36, %v681_v52  ;;  %v762_v19 = vsel %vm757_vm3, %v734_v46, %v761_v17  ;;  %v331_v20 = vpop.permute.xlu0 %330  ;;  %v411_v23 = vpop.permute.xlu1 %410  ;;  %1454 = vmatpush1.bf16.msra.mxu1 %v2011_v42 }
  0xb9   : > { %v346_v27 = vrot.slane %v331_v20, 4  ;;  %v426_v28 = vrot.slane %v411_v23, 4  ;;  %v2030_v29 = vcombine.low %v682_v18, %v762_v19  ;;  %v2031_v30 = vcombine.high %v682_v18, %v762_v19 }
  0xbb   : > { %v356_v31 = vsel %vm272_vm0, %v345_v63, %v346_v27  ;;  %v436_v32 = vsel %vm272_vm0, %v425_v14, %v426_v28  ;;  %1492 = vmatprep.subr.bf16.mxu0 %v2031_v30 }
  0xbc   : > { %v357_v36 = vsel %vm354_vm7, %v2448_v61, %v356_v31  ;;  %v437_v38 = vsel %vm434_vm8, %v2458_v12, %v436_v32  ;;  %v2547_v39 = vpop.permute.xlu0 %493  ;;  %v2549_v40 = vpop.permute.xlu1 %574  ;;  %1493 = vmatpush1.bf16.msra.mxu0 %v2030_v29 }
  0xbd   : > { %v508_v41 = vrot.slane %v2547_v39, 4  ;;  %v589_v63 = vrot.slane %v2549_v40, 4  ;;  %v1995_v24 = vcombine.high %v357_v36, %v437_v38  ;;  %v1994_v21 = vcombine.low %v357_v36, %v437_v38 }
  0xbf   : > { %v519_v14 = vsel %vm272_vm0, %v507_v58, %v508_v41  ;;  %v600_v61 = vsel %vm272_vm0, %v588_v2, %v589_v63  ;;  %1455 = vmatprep.subr.bf16.mxu1 %v1995_v24 }
  0xc0   : > { %v520_v12 = vsel %vm515_vm4, %v492_v56, %v519_v14  ;;  %v601_v43 = vsel %vm596_vm5, %v573_v57, %v600_v61  ;;  %v250_v45 = vpop.permute.xlu0 %249  ;;  %v2561_v46 = vpop.permute.xlu1 %332  ;;  %1456 = vmatpush1.bf16.msra.mxu1 %v1994_v21 }
  0xc1   : > { %v265_v48 = vrot.slane %v250_v45, 4  ;;  %v347_v50 = vrot.slane %v2561_v46, 4  ;;  %v2013_v25 = vcombine.low %v520_v12, %v601_v43  ;;  %v2014_v51 = vcombine.high %v520_v12, %v601_v43 }
  0xc3   : > { %v276_v53 = vsel %vm272_vm0, %v264_v37, %v265_v48  ;;  %v358_v22 = vsel %vm272_vm0, %v346_v27, %v347_v50  ;;  %1494 = vmatprep.subr.bf16.mxu0 %v2014_v51 }
  0xc4   : > { %v277_v55 = vsel %vm274_vm9, %v2475_v34, %v276_v53  ;;  %v359_v56 = vsel %vm354_vm7, %v331_v20, %v358_v22  ;;  %v2573_v57 = vpop.permute.xlu0 %412  ;;  %v818_v58 = vpop.permute.xlu1 %817  ;;  %1495 = vmatpush1.bf16.msra.mxu0 %v2013_v25 }
  0xc5   : > { %v427_v2 = vrot.slane %v2573_v57, 4  ;;  %v831_v59 = vrot.slane %v818_v58, 4  ;;  %v1978_v60 = vcombine.high %v2277_v1, %v277_v55  ;;  %v1977_v37 = vcombine.low %v2277_v1, %v277_v55 }
  0xc7   : > { %v438_v62 = vsel %vm272_vm0, %v426_v28, %v427_v2  ;;  %v843_v34 = vsel %vm272_vm0, %v830_v49, %v831_v59  ;;  %1457 = vmatprep.subr.bf16.mxu1 %v1978_v60 }
  0xc8   : > { %v439_v0 = vsel %vm434_vm8, %v411_v23, %v438_v62  ;;  %v844_v33 = vsel %vm837_vm1, %v2489_v47, %v843_v34  ;;  %v2587_v3 = vpop.permute.xlu0 %251  ;;  %v658_v7 = vpop.permute.xlu1 %657  ;;  %1458 = vmatpush1.bf16.msra.mxu1 %v1977_v37 }
  0xc9   : > { %v266_v1 = vrot.slane %v2587_v3, 4  ;;  %v671_v9 = vrot.slane %v658_v7, 4  ;;  %v1996_v44 = vcombine.low %v359_v56, %v439_v0  ;;  %v1997_v15 = vcombine.high %v359_v56, %v439_v0 }
  0xca   : > { %v2050_v42 = vcombine.high %v844_v33, %v844_v33  ;;  %v2049_v52 = vcombine.low %v844_v33, %v844_v33 }
  0xcb   : > { %v278_v49 = vsel %vm272_vm0, %v265_v48, %v266_v1  ;;  %v683_v17 = vsel %vm272_vm0, %v670_v54, %v671_v9  ;;  %1496 = vmatprep.subr.bf16.mxu0 %v1997_v15  ;;  %2063 = vmatmul.mubr.msk.bf16.vlgmr.msra.gmra.mxu1 %vm1346_vm10, %v2506_v35 }
  0xcc   : > { %v279_v47 = vsel %vm274_vm9, %v250_v45, %v278_v49  ;;  %v684_v18 = vsel %vm677_vm2, %v2519_v10, %v683_v17  ;;  %v738_v19 = vpop.permute.xlu0 %737  ;;  %v2601_v20 = vpop.permute.xlu1 %819  ;;  %2066 = vmatprep.subr.msk.bf16.mxu1 %vm272_vm0, %v2050_v42  ;;  %1497 = vmatpush1.bf16.msra.mxu0 %v1996_v44  ;;  %v1370_v23 = vsel %vm272_vm0, %v2049_v52, 0 }
  0xcd   : > { %v751_v27 = vrot.slane %v738_v19, 4  ;;  %v832_v54 = vrot.slane %v2601_v20, 4  ;;  %1532 = vmatpush1.bf16.msra.mxu1 %v1370_v23  ;;  %v1979_v28 = vcombine.low %v2286_v4, %v279_v47  ;;  %v1980_v29 = vcombine.high %v2286_v4, %v279_v47  ;;  %1557 = vmatprep.mubr.bf16.mxu1 %v2210_v8 }
  0xcf   : > { %v763_v10 = vsel %vm272_vm0, %v750_v13, %v751_v27  ;;  %v845_v30 = vsel %vm272_vm0, %v831_v59, %v832_v54  ;;  %1498 = vmatprep.subr.bf16.mxu0 %v1980_v29 }
  0xd0   : > { %v764_v31 = vsel %vm757_vm3, %v2521_v11, %v763_v10  ;;  %v846_v32 = vsel %vm837_vm1, %v818_v58, %v845_v30  ;;  %v496_v36 = vpop.permute.xlu0 %495  ;;  %v577_v38 = vpop.permute.xlu1 %576  ;;  %1499 = vmatpush1.bf16.msra.mxu0 %v1979_v28 }
  0xd1   : > { %v509_v4 = vrot.slane %v496_v36, 4  ;;  %v590_v24 = vrot.slane %v577_v38, 4  ;;  %v2032_v21 = vcombine.low %v684_v18, %v764_v31  ;;  %v2033_v14 = vcombine.high %v684_v18, %v764_v31 }
  0xd2   : > { %v2052_v61 = vcombine.high %v846_v32, %v846_v32  ;;  %v2051_v12 = vcombine.low %v846_v32, %v846_v32 }
  0xd3   : > { %v521_v13 = vsel %vm272_vm0, %v508_v41, %v509_v4  ;;  %v602_v43 = vsel %vm272_vm0, %v589_v63, %v590_v24  ;;  %1533 = vmatprep.subr.bf16.mxu1 %v2033_v14  ;;  %2065 = vmatmul.mubr.msk.bf16.vlgmr.msra.gmra.mxu0 %vm1346_vm10, %v2506_v35 }
  0xd4   : > { %v522_v11 = vsel %vm515_vm4, %v2547_v39, %v521_v13  ;;  %v603_v45 = vsel %vm596_vm5, %v2549_v40, %v602_v43  ;;  %v2630_v48 = vpop.permute.xlu0 %659  ;;  %v2632_v25 = vpop.permute.xlu1 %739  ;;  %2068 = vmatprep.subr.msk.bf16.mxu0 %vm272_vm0, %v2052_v61  ;;  %1534 = vmatpush1.bf16.msra.mxu1 %v2032_v21  ;;  %v1376_v41 = vsel %vm272_vm0, %v2051_v12, 0 }
  0xd5   : > { %v672_v63 = vrot.slane %v2630_v48, 4  ;;  %v752_v51 = vrot.slane %v2632_v25, 4  ;;  %1573 = vmatpush1.bf16.msra.mxu0 %v1376_v41  ;;  %v2015_v53 = vcombine.low %v522_v11, %v603_v45  ;;  %v2016_v22 = vcombine.high %v522_v11, %v603_v45  ;;  %1598 = vmatprep.mubr.bf16.mxu0 %v2210_v8 }
  0xd7   : > { %v685_v39 = vsel %vm272_vm0, %v671_v9, %v672_v63  ;;  %v765_v40 = vsel %vm272_vm0, %v751_v27, %v752_v51  ;;  %1535 = vmatprep.subr.bf16.mxu1 %v2016_v22 }
  0xd8   : > { %v686_v55 = vsel %vm677_vm2, %v658_v7, %v685_v39  ;;  %v766_v56 = vsel %vm757_vm3, %v738_v19, %v765_v40  ;;  %v335_v58 = vpop.permute.xlu0 %334  ;;  %v415_v59 = vpop.permute.xlu1 %414  ;;  %1536 = vmatpush1.bf16.msra.mxu1 %v2015_v53 }
  0xd9   : > { %v348_v60 = vrot.slane %v335_v58, 4  ;;  %v428_v37 = vrot.slane %v415_v59, 4  ;;  %v2034_v62 = vcombine.low %v686_v55, %v766_v56  ;;  %v2035_v34 = vcombine.high %v686_v55, %v766_v56 }
  0xdb   : > { %v360_v0 = vsel %vm272_vm0, %v347_v50, %v348_v60  ;;  %v440_v33 = vsel %vm272_vm0, %v427_v2, %v428_v37  ;;  %1574 = vmatprep.subr.bf16.mxu0 %v2035_v34 }
  0xdc   : > { %v361_v7 = vsel %vm354_vm7, %v2561_v46, %v360_v0  ;;  %v441_v9 = vsel %vm434_vm8, %v2573_v57, %v440_v33  ;;  %v2657_v44 = vpop.permute.xlu0 %497  ;;  %v2659_v15 = vpop.permute.xlu1 %578  ;;  %1575 = vmatpush1.bf16.msra.mxu0 %v2034_v62 }
  0xdd   : > { %v510_v42 = vrot.slane %v2657_v44, 4  ;;  %v591_v50 = vrot.slane %v2659_v15, 4  ;;  %v1998_v52 = vcombine.low %v361_v7, %v441_v9  ;;  %v1999_v49 = vcombine.high %v361_v7, %v441_v9 }
  0xdf   : > { %v523_v2 = vsel %vm272_vm0, %v509_v4, %v510_v42  ;;  %v604_v46 = vsel %vm272_vm0, %v590_v24, %v591_v50  ;;  %1537 = vmatprep.subr.bf16.mxu1 %v1999_v49 }
  0xe0   : > { %v524_v57 = vsel %vm515_vm4, %v496_v36, %v523_v2  ;;  %v605_v17 = vsel %vm596_vm5, %v577_v38, %v604_v46  ;;  %v254_v47 = vpop.permute.xlu0 %253  ;;  %v2671_v18 = vpop.permute.xlu1 %336  ;;  %1538 = vmatpush1.bf16.msra.mxu1 %v1998_v52 }
  0xe1   : > { %v267_v19 = vrot.slane %v254_v47, 4  ;;  %v349_v23 = vrot.slane %v2671_v18, 4  ;;  %v2017_v27 = vcombine.low %v524_v57, %v605_v17  ;;  %v2018_v28 = vcombine.high %v524_v57, %v605_v17 }
  0xe3   : > { %v280_v29 = vsel %vm272_vm0, %v266_v1, %v267_v19  ;;  %v362_v10 = vsel %vm272_vm0, %v348_v60, %v349_v23  ;;  %1576 = vmatprep.subr.bf16.mxu0 %v2018_v28 }
  0xe4   : > { %v281_v30 = vsel %vm274_vm9, %v2587_v3, %v280_v29  ;;  %v363_v31 = vsel %vm354_vm7, %v335_v58, %v362_v10  ;;  %v2683_v32 = vpop.permute.xlu0 %416  ;;  %v822_v36 = vpop.permute.xlu1 %821  ;;  %1577 = vmatpush1.bf16.msra.mxu0 %v2017_v27 }
  0xe5   : > { %v429_v38 = vrot.slane %v2683_v32, 4  ;;  %v833_v4 = vrot.slane %v822_v36, 4  ;;  %v1981_v24 = vcombine.low %v2289_v5, %v281_v30  ;;  %v1982_v1 = vcombine.high %v2289_v5, %v281_v30 }
  0xe7   : > { %v442_v21 = vsel %vm272_vm0, %v428_v37, %v429_v38  ;;  %v847_v3 = vsel %vm272_vm0, %v832_v54, %v833_v4  ;;  %1539 = vmatprep.subr.bf16.mxu1 %v1982_v1 }
  0xe8   : > { %v443_v14 = vsel %vm434_vm8, %v415_v59, %v442_v21  ;;  %v848_v61 = vsel %vm837_vm1, %v2601_v20, %v847_v3  ;;  %v2697_v12 = vpop.permute.xlu0 %255  ;;  %v662_v13 = vpop.permute.xlu1 %661  ;;  %1540 = vmatpush1.bf16.msra.mxu1 %v1981_v24 }
  0xe9   : > { %v268_v5 = vrot.slane %v2697_v12, 4  ;;  %v673_v43 = vrot.slane %v662_v13, 4  ;;  %v2000_v11 = vcombine.low %v363_v31, %v443_v14  ;;  %v2001_v45 = vcombine.high %v363_v31, %v443_v14 }
  0xea   : > { %v2054_v41 = vcombine.high %v848_v61, %v848_v61  ;;  %v2053_v53 = vcombine.low %v848_v61, %v848_v61 }
  0xeb   : > { %v282_v54 = vsel %vm272_vm0, %v267_v19, %v268_v5  ;;  %v687_v22 = vsel %vm272_vm0, %v672_v63, %v673_v43  ;;  %2067 = vmatmul.mubr.msk.bf16.vlgmr.msra.gmra.mxu1 %vm1346_vm10, %v2506_v35  ;;  %1578 = vmatprep.subr.bf16.mxu0 %v2001_v45 }
  0xec   : > { %v283_v20 = vsel %vm274_vm9, %v254_v47, %v282_v54  ;;  %v688_v39 = vsel %vm677_vm2, %v2630_v48, %v687_v22  ;;  %v742_v40 = vpop.permute.xlu0 %741  ;;  %v2711_v55 = vpop.permute.xlu1 %823  ;;  %2070 = vmatprep.subr.msk.bf16.mxu1 %vm272_vm0, %v2054_v41  ;;  %1579 = vmatpush1.bf16.msra.mxu0 %v2000_v11  ;;  %v1382_v56 = vsel %vm272_vm0, %v2053_v53, 0 }
  0xed   : > { %v753_v58 = vrot.slane %v742_v40, 4  ;;  %v834_v63 = vrot.slane %v2711_v55, 4  ;;  %1614 = vmatpush1.bf16.msra.mxu1 %v1382_v56  ;;  %v1983_v59 = vcombine.low %v2292_v6, %v283_v20  ;;  %v1984_v60 = vcombine.high %v2292_v6, %v283_v20  ;;  %1639 = vmatprep.mubr.bf16.mxu1 %v2210_v8 }
  0xef   : > { %v767_v48 = vsel %vm272_vm0, %v752_v51, %v753_v58  ;;  %v849_v37 = vsel %vm272_vm0, %v833_v4, %v834_v63  ;;  %1580 = vmatprep.subr.bf16.mxu0 %v1984_v60 }
  0xf0   : > { %v768_v62 = vsel %vm757_vm3, %v2632_v25, %v767_v48  ;;  %v850_v34 = vsel %vm837_vm1, %v822_v36, %v849_v37  ;;  %v500_v0 = vpop.permute.xlu0 %499  ;;  %v581_v33 = vpop.permute.xlu1 %580  ;;  %1581 = vmatpush1.bf16.msra.mxu0 %v1983_v59 }
  0xf1   : > { %v511_v6 = vrot.slane %v500_v0, 4  ;;  %v592_v7 = vrot.slane %v581_v33, 4  ;;  %v2036_v9 = vcombine.low %v688_v39, %v768_v62  ;;  %v2037_v52 = vcombine.high %v688_v39, %v768_v62 }
  0xf2   : > { %v2056_v49 = vcombine.high %v850_v34, %v850_v34  ;;  %v2055_v2 = vcombine.low %v850_v34, %v850_v34 }
  0xf3   : > { %v525_v51 = vsel %vm272_vm0, %v510_v42, %v511_v6  ;;  %v606_v46 = vsel %vm272_vm0, %v591_v50, %v592_v7  ;;  %1615 = vmatprep.subr.bf16.mxu1 %v2037_v52  ;;  %2069 = vmatmul.mubr.msk.bf16.vlgmr.msra.gmra.mxu0 %vm1346_vm10, %v2506_v35 }
  0xf4   : > { %v526_v25 = vsel %vm515_vm4, %v2657_v44, %v525_v51  ;;  %v607_v57 = vsel %vm596_vm5, %v2659_v15, %v606_v46  ;;  %v2740_v17 = vpop.permute.xlu0 %663  ;;  %v2742_v47 = vpop.permute.xlu1 %743  ;;  %2072 = vmatprep.subr.msk.bf16.mxu0 %vm272_vm0, %v2056_v49  ;;  %1616 = vmatpush1.bf16.msra.mxu1 %v2036_v9  ;;  %v1388_v42 = vsel %vm272_vm0, %v2055_v2, 0 }
  0xf5   : > { %v674_v50 = vrot.slane %v2740_v17, 4  ;;  %v754_v19 = vrot.slane %v2742_v47, 4  ;;  %1655 = vmatpush1.bf16.msra.mxu0 %v1388_v42  ;;  %v2019_v27 = vcombine.low %v526_v25, %v607_v57  ;;  %v2020_v28 = vcombine.high %v526_v25, %v607_v57  ;;  %1680 = vmatprep.mubr.bf16.mxu0 %v2210_v8 }
  0xf7   : > { %v689_v44 = vsel %vm272_vm0, %v673_v43, %v674_v50  ;;  %v769_v15 = vsel %vm272_vm0, %v753_v58, %v754_v19  ;;  %1617 = vmatprep.subr.bf16.mxu1 %v2020_v28 }
  0xf8   : > { %v690_v29 = vsel %vm677_vm2, %v662_v13, %v689_v44  ;;  %v770_v10 = vsel %vm757_vm3, %v742_v40, %v769_v15  ;;  %v339_v30 = vpop.permute.xlu0 %338  ;;  %v419_v31 = vpop.permute.xlu1 %418  ;;  %1618 = vmatpush1.bf16.msra.mxu1 %v2019_v27 }
  0xf9   : > { %v350_v36 = vrot.slane %v339_v30, 4  ;;  %v430_v4 = vrot.slane %v419_v31, 4  ;;  %v2038_v24 = vcombine.low %v690_v29, %v770_v10  ;;  %v2039_v1 = vcombine.high %v690_v29, %v770_v10 }
  0xfb   : > { %v364_v21 = vsel %vm272_vm0, %v349_v23, %v350_v36  ;;  %v444_v3 = vsel %vm272_vm0, %v429_v38, %v430_v4  ;;  %1656 = vmatprep.subr.bf16.mxu0 %v2039_v1 }
  0xfc   : > { %v365_v14 = vsel %vm354_vm7, %v2671_v18, %v364_v21  ;;  %v445_v61 = vsel %vm434_vm8, %v2683_v32, %v444_v3  ;;  %v2767_v13 = vpop.permute.xlu0 %501  ;;  %v2769_v43 = vpop.permute.xlu1 %582  ;;  %1657 = vmatpush1.bf16.msra.mxu0 %v2038_v24 }
  0xfd   : > { %v512_v11 = vrot.slane %v2767_v13, 4  ;;  %v593_v23 = vrot.slane %v2769_v43, 4  ;;  %v2002_v45 = vcombine.low %v365_v14, %v445_v61  ;;  %v2003_v41 = vcombine.high %v365_v14, %v445_v61 }
  0xff   : > { %v527_v38 = vsel %vm272_vm0, %v511_v6, %v512_v11  ;;  %v608_v18 = vsel %vm272_vm0, %v592_v7, %v593_v23  ;;  %1619 = vmatprep.subr.bf16.mxu1 %v2003_v41 }
 0x100   : > { %v528_v32 = vsel %vm515_vm4, %v500_v0, %v527_v38  ;;  %v609_v53 = vsel %vm596_vm5, %v581_v33, %v608_v18  ;;  %v258_v54 = vpop.permute.xlu0 %257  ;;  %v2781_v22 = vpop.permute.xlu1 %340  ;;  %1620 = vmatpush1.bf16.msra.mxu1 %v2002_v45 }
 0x101   : > { %v269_v20 = vrot.slane %v258_v54, 4  ;;  %v351_v39 = vrot.slane %v2781_v22, 4  ;;  %v2021_v40 = vcombine.low %v528_v32, %v609_v53  ;;  %v2022_v56 = vcombine.high %v528_v32, %v609_v53 }
 0x103   : > { %v284_v58 = vsel %vm272_vm0, %v268_v5, %v269_v20  ;;  %v366_v59 = vsel %vm272_vm0, %v350_v36, %v351_v39  ;;  %1658 = vmatprep.subr.bf16.mxu0 %v2022_v56 }
 0x104   : > { %v285_v60 = vsel %vm274_vm9, %v2697_v12, %v284_v58  ;;  %v367_v48 = vsel %vm354_vm7, %v339_v30, %v366_v59  ;;  %v2793_v37 = vpop.permute.xlu0 %420  ;;  %v826_v62 = vpop.permute.xlu1 %825  ;;  %1659 = vmatpush1.bf16.msra.mxu0 %v2021_v40 }
 0x105   : > { %v431_v34 = vrot.slane %v2793_v37, 4  ;;  %v835_v0 = vrot.slane %v826_v62, 4  ;;  %870 = vst.msk [vmem:[#allocation2 + $0x260] sm:$0xf] %vm225_vm6, %v826_v62  ;;  %v1985_v5 = vcombine.low %v2385_v16, %v285_v60  ;;  %v1986_v33 = vcombine.high %v2385_v16, %v285_v60  ;;  %v2161_v62 = vld [vmem:[#allocation2 + $0x38] sm:$0xff] }
 0x107   : > { %v446_v6 = vsel %vm272_vm0, %v430_v4, %v431_v34  ;;  %v851_v12 = vsel %vm272_vm0, %v834_v63, %v835_v0  ;;  %1621 = vmatprep.subr.bf16.mxu1 %v1986_v33 }
 0x108   : > { %v447_v7 = vsel %vm434_vm8, %v419_v31, %v446_v6  ;;  %v852_v9 = vsel %vm837_vm1, %v2711_v55, %v851_v12  ;;  %v2808_v52 = vpop.permute.xlu0 %259  ;;  %v666_v49 = vpop.permute.xlu1 %665  ;;  %1622 = vmatpush1.bf16.msra.mxu1 %v1985_v5 }
 0x109   : > { %v270_v16 = vrot.slane %v2808_v52, 4  ;;  %v675_v2 = vrot.slane %v666_v49, 4  ;;  %710 = vst.msk [vmem:[#allocation2 + $0x1d8] sm:$0xf] %vm225_vm6, %v666_v49  ;;  %v2004_v51 = vcombine.low %v367_v48, %v447_v7  ;;  %v2005_v46 = vcombine.high %v367_v48, %v447_v7 }
 0x10a   : > { %v2058_v25 = vcombine.high %v852_v9, %v852_v9  ;;  %v2057_v57 = vcombine.low %v852_v9, %v852_v9  ;;  %v2213_v9 = vmov 1983009808   ;;  %v1792_v49 = vlaneseq }
 0x10b   : > { %v286_v63 = vsel %vm272_vm0, %v269_v20, %v270_v16  ;;  %v691_v55 = vsel %vm272_vm0, %v674_v50, %v675_v2  ;;  %2071 = vmatmul.mubr.msk.bf16.vlgmr.msra.gmra.mxu1 %vm1346_vm10, %v2506_v35  ;;  %1660 = vmatprep.subr.bf16.mxu0 %v2005_v46 }
 0x10c   : > { %v287_v42 = vsel %vm274_vm9, %v258_v54, %v286_v63  ;;  %v692_v27 = vsel %vm677_vm2, %v2740_v17, %v691_v55  ;;  %v746_v28 = vpop.permute.xlu0 %745  ;;  %v504_v44 = vpop.permute.xlu1 %503  ;;  %2074 = vmatprep.subr.msk.bf16.mxu1 %vm272_vm0, %v2058_v25  ;;  %1661 = vmatpush1.bf16.msra.mxu0 %v2004_v51  ;;  %v1394_v15 = vsel %vm272_vm0, %v2057_v57, 0  ;;  %v2156_v29 = vld [vmem:[#allocation2 + $0x260] ss:$0 sps:$4 sm:$0xff]   ;;  %v1793_v25 = vshrl.u32 %v1792_v49, 7 }
 0x10d   : > { %v755_v10 = vrot.slane %v746_v28, 4  ;;  %790 = vst.msk [vmem:[#allocation2 + $0x21c] sm:$0xf] %vm225_vm6, %v746_v28  ;;  %v513_v50 = vrot.slane %v504_v44, 4  ;;  %1696 = vmatpush1.bf16.msra.mxu1 %v1394_v15  ;;  %v1987_v30 = vcombine.low %v2399_v26, %v287_v42  ;;  %v1988_v31 = vcombine.high %v2399_v26, %v287_v42  ;;  %1721 = vmatprep.mubr.bf16.mxu1 %v2210_v8 }
 0x10f   : > { %v771_v17 = vsel %vm272_vm0, %v754_v19, %v755_v10  ;;  %v529_v36 = vsel %vm272_vm0, %v512_v11, %v513_v50  ;;  %v531_v4 = vsel %vm515_vm4, %v504_v44, %v513_v50  ;;  %1662 = vmatprep.subr.bf16.mxu0 %v1988_v31  ;;  %v1400_v19 = vsel %vm272_vm0, %v2156_v29, 0 }
 0x110   : > { %v772_v24 = vsel %vm757_vm3, %v2742_v47, %v771_v17  ;;  %v530_v1 = vsel %vm515_vm4, %v2767_v13, %v529_v36  ;;  %549 = vst.msk [vmem:[#allocation2 + $0x150] sm:$0xf] %vm225_vm6, %v531_v4  ;;  %v585_v8 = vpop.permute.xlu0 %584  ;;  %v343_v26 = vpop.permute.xlu1 %342  ;;  %1663 = vmatpush1.bf16.msra.mxu0 %v1987_v30  ;;  %v2211_v11 = vmov 0.0  }
 0x111   : > { %v594_v21 = vrot.slane %v585_v8, 4  ;;  %v352_v3 = vrot.slane %v343_v26, 4  ;;  %387 = vst.msk [vmem:[#allocation2 + $0xc8] sm:$0xf] %vm225_vm6, %v343_v26  ;;  %v2040_v14 = vcombine.low %v692_v27, %v772_v24  ;;  %v2041_v61 = vcombine.high %v692_v27, %v772_v24  ;;  %2085 = vmatprep.subr.bf16.mxu0 %v2211_v11 }
 0x113   : > { %v610_v47 = vsel %vm272_vm0, %v593_v23, %v594_v21  ;;  %v612_v13 = vsel %vm596_vm5, %v585_v8, %v594_v21  ;;  %v368_v45 = vsel %vm272_vm0, %v351_v39, %v352_v3  ;;  %2073 = vmatmul.mubr.msk.bf16.vlgmr.msra.gmra.mxu0 %vm1346_vm10, %v2506_v35  ;;  %1697 = vmatprep.subr.bf16.mxu1 %v2041_v61 }
 0x114   : > { %v611_v41 = vsel %vm596_vm5, %v2769_v43, %v610_v47  ;;  %630 = vst.msk [vmem:[#allocation2 + $0x194] sm:$0xf] %vm225_vm6, %v612_v13  ;;  %v369_v38 = vsel %vm354_vm7, %v2781_v22, %v368_v45  ;;  %v423_v18 = vpop.permute.xlu0 %422  ;;  %v262_v23 = vpop.permute.xlu1 %261  ;;  %1698 = vmatpush1.bf16.msra.mxu1 %v2040_v14  ;;  %2086 = vmatpush3.bf16.msra.mxu0 %v1400_v19  ;;  %v2157_v39 = vld [vmem:[#allocation2 + $0x1d8] ss:$68 sps:$4 sm:$0xff]  }
 0x115   : > { %v432_v32 = vrot.slane %v423_v18, 4  ;;  %v271_v53 = vrot.slane %v262_v23, 4  ;;  %307 = vst.msk [vmem:[#allocation2 + $0x84] sm:$0xf] %vm225_vm6, %v262_v23  ;;  %v2023_v54 = vcombine.low %v530_v1, %v611_v41  ;;  %v2024_v20 = vcombine.high %v530_v1, %v611_v41  ;;  %2087 = vmatprep.subr.bf16.mxu0 %v2211_v11  ;;  %2095 = vmatprep.mubr.msk.bf16.mxu0 %vm2212_vm11, %v2211_v11 }
 0x117   : > { %v448_v43 = vsel %vm272_vm0, %v431_v34, %v432_v32  ;;  %v450_v22 = vsel %vm434_vm8, %v423_v18, %v432_v32  ;;  %v288_v40 = vsel %vm272_vm0, %v270_v16, %v271_v53  ;;  %1699 = vmatprep.subr.bf16.mxu1 %v2024_v20 }
 0x118   : > { %v449_v56 = vsel %vm434_vm8, %v2793_v37, %v448_v43  ;;  %468 = vst.msk [vmem:[#allocation2 + $0x10c] sm:$0xf] %vm225_vm6, %v450_v22  ;;  %v289_v58 = vsel %vm274_vm9, %v2808_v52, %v288_v40  ;;  %1700 = vmatpush1.bf16.msra.mxu1 %v2023_v54  ;;  %2088 = vmatpush3.bf16.msra.mxu0 %v2157_v39  ;;  %v1790_v52 = vunpack.c.l.s4 %v2213_v9 }
 0x119   : > { %v2006_v59 = vcombine.low %v369_v38, %v449_v56  ;;  %v2007_v60 = vcombine.high %v369_v38, %v449_v56  ;;  %2089 = vmatprep.subr.bf16.mxu0 %v2211_v11  ;;  %v1990_v34 = vcombine.high %v2161_v62, %v289_v58  ;;  %v1989_v0 = vcombine.low %v2161_v62, %v289_v58 }
 0x11a   : > { %v1791_v46 = vunpack.c.0.s8 %v1790_v52 }
 0x11b   : > { %1701 = vmatprep.subr.bf16.mxu1 %v2007_v60  ;;  %v2158_v48 = vld [vmem:[#allocation2 + $0x150] ss:$68 sps:$4 sm:$0xff]  }
 0x11c   : > { %1702 = vmatpush1.bf16.msra.mxu1 %v2006_v59  ;;  %2090 = vmatpush3.bf16.msra.mxu0 %v2158_v48  ;;  %v2160_v5 = vld [vmem:[#allocation2 + $0x40] ss:$68 sps:$4 sm:$0xff]   ;;  %v2881_v55 = vsub.s32 %v1791_v46, %v1793_v25 }
 0x11d   : > { %1703 = vmatprep.subr.bf16.mxu1 %v1990_v34  ;;  %2091 = vmatprep.subr.bf16.mxu0 %v2211_v11 }
 0x11f   : > { %v2159_v37 = vld [vmem:[#allocation2 + $0xc8] ss:$68 sps:$4 sm:$0xff]  }
 0x120   : > { %1704 = vmatpush1.bf16.msra.mxu1 %v1989_v0  ;;  %2092 = vmatpush3.bf16.msra.mxu0 %v2159_v37 }
 0x121   : > { %2093 = vmatprep.subr.bf16.mxu0 %v2211_v11  ;;  %v2874_v16 = vpop.permute.xlu0 %956 }
 0x123   : > { %2075 = vmatmul.mubr.msk.bf16.vlgmr.msra.gmra.mxu1 %vm1346_vm10, %v2506_v35 }
 0x124   : > { %2094 = vmatpush3.bf16.msra.mxu0 %v2160_v5 }
 0x127   : > { %2096 = vmatmul.mubr.msk.bf16.vlgmr.msra.gmra.mxu0 %vm1346_vm10, %v2506_v35 }
 0x174   : > { %v1436_v33 = vpop.f32.mrf.mxu0 }
 0x175   : > { %v1437_v2 = vadd.f32 %v1436_v33, %v2874_v16 }
 0x176   : > { %v1438_v6 = vpop.f32.mrf.mxu0 }
 0x177   : > { %v1439_v51 = vadd.f32 %v1438_v6, %v2874_v16 }
 0x178   : > { %v1440_v12 = vpop.f32.mrf.mxu0 }
 0x179   : > { %v1787_v63 = vcombine.low %v1437_v2, %v1439_v51 }
 0x17a   : > { %v1441_v7 = vpop.f32.mrf.mxu0 }
 0x17b   : > { %v1795_v15 = vrot.slane %v1787_v63, %v2881_v55 }
 0x18b   : > { %v1477_v57 = vpop.f32.mrf.mxu1 }
 0x18c   : > { %v1478_v35 = vadd.f32 %v1477_v57, %v2874_v16 }
 0x18d   : > { %v1479_v42 = vpop.f32.mrf.mxu1 }
 0x18e   : > { %v1480_v27 = vadd.f32 %v1479_v42, %v2874_v16 }
 0x18f   : > { %v1481_v28 = vpop.f32.mrf.mxu1 }
 0x190   : > { %v1788_v44 = vcombine.low %v1478_v35, %v1480_v27 }
 0x191   : > { %v1482_v29 = vpop.f32.mrf.mxu1 }
 0x192   : > { %v1802_v10 = vrot.slane %v1788_v44, %v2881_v55 }
 0x193   : > { %v1518_v50 = vpop.f32.mrf.mxu0 }
 0x194   : > { %v1803_v30 = vcombine.low %v1795_v15, %v1802_v10  ;;  %v1519_v4 = vadd.f32 %v1518_v50, %v2874_v16 }
 0x195   : > { %v1520_v31 = vpop.f32.mrf.mxu0 }
 0x196   : > { %1867 = vst [vmem:[%s2889_s22] sm:$0xff] %v1803_v30  ;;  %v1521_v24 = vadd.f32 %v1520_v31, %v2874_v16 }
 0x197   : > { %v1522_v17 = vpop.f32.mrf.mxu0 }
 0x198   : > { %v1804_v8 = vcombine.low %v1519_v4, %v1521_v24 }
 0x199   : > { %v1523_v36 = vpop.f32.mrf.mxu0 }
 0x19a   : > { %v1812_v14 = vrot.slane %v1804_v8, %v2881_v55 }
 0x1ab   : > { %v1559_v1 = vpop.f32.mrf.mxu1 }
 0x1ac   : > { %v1560_v26 = vadd.f32 %v1559_v1, %v2874_v16 }
 0x1ad   : > { %v1561_v19 = vpop.f32.mrf.mxu1 }
 0x1ae   : > { %v1562_v21 = vadd.f32 %v1561_v19, %v2874_v16 }
 0x1af   : > { %v1563_v3 = vpop.f32.mrf.mxu1 }
 0x1b0   : > { %v1805_v61 = vcombine.low %v1560_v26, %v1562_v21 }
 0x1b1   : > { %v1564_v11 = vpop.f32.mrf.mxu1 }
 0x1b2   : > { %v1819_v47 = vrot.slane %v1805_v61, %v2881_v55 }
 0x1b3   : > { %v1600_v13 = vpop.f32.mrf.mxu0 }
 0x1b4   : > { %v1820_v45 = vcombine.low %v1812_v14, %v1819_v47  ;;  %v1601_v23 = vadd.f32 %v1600_v13, %v2874_v16 }
 0x1b5   : > { %v1602_v41 = vpop.f32.mrf.mxu0 }
 0x1b6   : > { %1868 = vst [vmem:[%s2889_s22 + $0x8] sm:$0xff] %v1820_v45  ;;  %v1603_v32 = vadd.f32 %v1602_v41, %v2874_v16 }
 0x1b7   : > { %v1604_v38 = vpop.f32.mrf.mxu0 }
 0x1b8   : > { %v1821_v39 = vcombine.low %v1601_v23, %v1603_v32 }
 0x1b9   : > { %v1605_v18 = vpop.f32.mrf.mxu0 }
 0x1ba   : > { %v1829_v58 = vrot.slane %v1821_v39, %v2881_v55 }
 0x1cb   : > { %v1641_v53 = vpop.f32.mrf.mxu1 }
 0x1cc   : > { %v1642_v54 = vadd.f32 %v1641_v53, %v2874_v16 }
 0x1cd   : > { %v1643_v20 = vpop.f32.mrf.mxu1 }
 0x1ce   : > { %v1644_v43 = vadd.f32 %v1643_v20, %v2874_v16 }
 0x1cf   : > { %v1645_v22 = vpop.f32.mrf.mxu1 }
 0x1d0   : > { %v1822_v40 = vcombine.low %v1642_v54, %v1644_v43 }
 0x1d1   : > { %v1646_v56 = vpop.f32.mrf.mxu1 }
 0x1d2   : > { %v1836_v59 = vrot.slane %v1822_v40, %v2881_v55 }
 0x1d3   : > { %v1682_v60 = vpop.f32.mrf.mxu0 }
 0x1d4   : > { %v1837_v48 = vcombine.low %v1829_v58, %v1836_v59  ;;  %v1683_v37 = vadd.f32 %v1682_v60, %v2874_v16 }
 0x1d5   : > { %v1684_v62 = vpop.f32.mrf.mxu0 }
 0x1d6   : > { %1869 = vst [vmem:[%s2889_s22 + $0x10] sm:$0xff] %v1837_v48  ;;  %v1685_v5 = vadd.f32 %v1684_v62, %v2874_v16 }
 0x1d7   : > { %v1686_v34 = vpop.f32.mrf.mxu0 }
 0x1d8   : > { %v1838_v12 = vcombine.low %v1683_v37, %v1685_v5 }
 0x1d9   : > { %v1687_v0 = vpop.f32.mrf.mxu0 }
 0x1da   : > { %v1846_v25 = vrot.slane %v1838_v12, %v2881_v55 }
 0x1e3   : > { %v1723_v33 = vpop.f32.mrf.mxu1 }
 0x1e4   : > { %v1724_v7 = vadd.f32 %v1723_v33, %v2874_v16 }
 0x1e5   : > { %v1725_v6 = vpop.f32.mrf.mxu1 }
 0x1e6   : > { %v1726_v9 = vadd.f32 %v1725_v6, %v2874_v16 }
 0x1e7   : > { %v1727_v52 = vpop.f32.mrf.mxu1  ;;  %v1764_v2 = vpop.f32.mrf.mxu0 }
 0x1e8   : > { %v1839_v49 = vcombine.low %v1724_v7, %v1726_v9  ;;  %v1765_v51 = vadd.f32 %v1764_v2, %v2874_v16 }
 0x1e9   : > { %v1728_v46 = vpop.f32.mrf.mxu1  ;;  %v2097_v35 = vpop.f32.mrf.mxu0 }
 0x1ea   : > { %v1853_v57 = vrot.slane %v1839_v49, %v2881_v55  ;;  %v1861_v63 = vrot.slane %v1765_v51, %v2881_v55 }
 0x1eb   : > { %v1767_v27 = vpop.f32.mrf.mxu0 }
 0x1ec   : > { %v1854_v42 = vcombine.low %v1846_v25, %v1853_v57  ;;  %1872 = vst.msk [vmem:[%s2889_s22 + $0x20] sm:$0x3] %vm1871_vm12, %v1861_v63 }
 0x1ed   : > { %v2098_v28 = vpop.f32.mrf.mxu0 }
 0x1ee   : > { %1870 = vst [vmem:[%s2889_s22 + $0x18] sm:$0xff] %v1854_v42 }
 0x1ef PF: > { %s13_s16 = sadd.s32 1, %s2200_s16   ;;  %s2935_s12 = smov %s2192_s14 }
 0x1f0   : > { %p10_p7 = scmp.ge.s32.totalorder %s13_s16, 6   ;;  %s2936_s13 = smov %s2196_s15 }
 0x1f1   : > { %s2937_s14 = smov %s2940_s17  ;;  %s2938_s15 = smov %s2944_s18 }
 0x1f2   :  { %12 = sbr.rel (!%p10_p7) target bundleno = 3 (0x3), region = 62 }

</bundles_post_ra>
